<compile_context>
chip_gen: v7x
topology: tpu7x:2x2x1
jax: 0.10.0
libtpu: 0.0.40
codegen_flags: <defaults>
</compile_context>

<pallas_src>
import functools

import jax
import jax.numpy as jnp
from jax.experimental import pallas as pl
from jax.experimental.pallas import tpu as pltpu

LEAKY_SLOPE = 0.01
BN_EPS = 1e-5
LANE = 128

HIDDEN_DIMS = [300, 100, 75, 75, 75, 50, 50, 50, 50, 50]
N_HIDDEN = len(HIDDEN_DIMS)


def _round_up(n, m=LANE):
    return ((n + m - 1) // m) * m


def _layout(noise_dim, num_features):
    """Static packed-slab layout for all 11 linear layers."""
    dims_in = [noise_dim] + HIDDEN_DIMS
    dims_out = HIDDEN_DIMS + [num_features]
    in_pads = tuple(_round_up(d) for d in dims_in)
    out_pads = tuple(_round_up(d) for d in dims_out)
    row_offs, off = [], 0
    for p in in_pads:
        row_offs.append(off)
        off += p
    total_rows = off
    w_cols = max(out_pads)
    gb_rows = _round_up(2 * N_HIDDEN + 1, 8)   # 10 gammas + 10 betas + final bias
    return in_pads, out_pads, tuple(row_offs), total_rows, w_cols, gb_rows


# --------------------------------------------------------------------------
# Fused Pallas kernel: whole Generator.forward, 3 inputs (x, weight slab,
# gamma/beta/bias slab), all VMEM-resident.
# --------------------------------------------------------------------------
def _make_generator_kernel(in_pads, out_pads, row_offs):
    def kernel(x_ref, w_ref, gb_ref, o_ref):
        h = x_ref[...]                        # f32 (B, in_pads[0])
        inv_n = 1.0 / h.shape[0]

        for i in range(N_HIDDEN):
            r, ip, op = row_offs[i], in_pads[i], out_pads[i]

            # Linear (bias=False): bf16 operands, f32 MXU accumulation.
            w = w_ref[r:r + ip, :op]          # bf16 (ip, op), tile-aligned slice
            h = jnp.dot(h.astype(jnp.bfloat16), w,
                        preferred_element_type=jnp.float32)

            # LeakyReLU(0.01) as a single vmax.
            h = jnp.maximum(h, LEAKY_SLOPE * h)

            # BatchNorm1d (training): one-pass batch stats, f32, clamped var.
            s = jnp.sum(h, axis=0, keepdims=True)
            sq = jnp.sum(h * h, axis=0, keepdims=True)
            mean = s * inv_n
            var = jnp.maximum(sq * inv_n - mean * mean, 0.0)

            gamma = gb_ref[i:i + 1, :op]                      # (1, op) f32
            beta = gb_ref[N_HIDDEN + i:N_HIDDEN + i + 1, :op]
            scale = jax.lax.rsqrt(var + BN_EPS) * gamma       # fold gamma
            shift = beta - mean * scale
            h = h * scale + shift                             # one fma / elem

        # Final Linear (with bias).
        r, ip, op = row_offs[N_HIDDEN], in_pads[N_HIDDEN], out_pads[N_HIDDEN]
        w = w_ref[r:r + ip, :op]
        b = gb_ref[2 * N_HIDDEN:2 * N_HIDDEN + 1, :op]
        o_ref[...] = jnp.dot(h.astype(jnp.bfloat16), w,
                             preferred_element_type=jnp.float32) + b

    return kernel


# --------------------------------------------------------------------------
# Jitted wrapper: pad input, single pallas_call, slice real output columns.
# --------------------------------------------------------------------------
@functools.partial(jax.jit, static_argnames=("num_features",))
def generator_forward(packed, x, num_features):
    batch, noise_dim = x.shape
    in_pads, out_pads, row_offs, total_rows, w_cols, gb_rows = _layout(
        noise_dim, num_features)

    x_p = jnp.zeros((batch, in_pads[0]), jnp.float32)
    x_p = x_p.at[:, :noise_dim].set(x.astype(jnp.float32))

    # VMEM budget from actual shapes (capped for v7x's 64 MiB physical VMEM).
    param_bytes = total_rows * w_cols * 2 + gb_rows * w_cols * 4
    io_bytes = batch * (in_pads[0] + out_pads[-1]) * 4
    act_bytes = 8 * batch * max(out_pads) * 4          # generous live-temp slack
    need = param_bytes + io_bytes + act_bytes + (2 << 20)
    vmem_limit = int(min(max(need, 32 << 20), 56 << 20))

    vmem = pl.BlockSpec(memory_space=pltpu.MemorySpace.VMEM)
    kernel = _make_generator_kernel(in_pads, out_pads, row_offs)

    out = pl.pallas_call(
        kernel,
        out_shape=jax.ShapeDtypeStruct((batch, out_pads[-1]), jnp.float32),
        in_specs=[vmem, vmem, vmem],
        out_specs=vmem,
        compiler_params=pltpu.CompilerParams(vmem_limit_bytes=vmem_limit),
    )(x_p, packed["w"], packed["gb"])

    return out[:, :num_features]


# --------------------------------------------------------------------------
# Parameter construction (mimics PyTorch Linear default init
# U[-1/sqrt(fan_in), 1/sqrt(fan_in)]; BN gamma=1, beta=0), at true sizes.
# --------------------------------------------------------------------------
def init_generator_params(key, noise_dim, num_features):
    dims = [noise_dim] + HIDDEN_DIMS
    params = {"hidden": [], "final": None}
    for i in range(N_HIDDEN):
        key, wk = jax.random.split(key)
        fan_in, fan_out = dims[i], dims[i + 1]
        bound = 1.0 / jnp.sqrt(fan_in)
        w = jax.random.uniform(wk, (fan_in, fan_out), jnp.float32,
                               minval=-bound, maxval=bound)
        gamma = jnp.ones((1, fan_out), jnp.float32)
        beta = jnp.zeros((1, fan_out), jnp.float32)
        params["hidden"].append((w, gamma, beta))
    key, wk, bk = jax.random.split(key, 3)
    fan_in = HIDDEN_DIMS[-1]
    bound = 1.0 / jnp.sqrt(fan_in)
    w_final = jax.random.uniform(wk, (fan_in, num_features), jnp.float32,
                                 minval=-bound, maxval=bound)
    b_final = jax.random.uniform(bk, (1, num_features), jnp.float32,
                                 minval=-bound, maxval=bound)
    params["final"] = (w_final, b_final)
    return params


def pack_generator_params(params, noise_dim, num_features):
    """Pack all parameters into one bf16 weight slab + one f32 gamma/beta/bias slab."""
    in_pads, out_pads, row_offs, total_rows, w_cols, gb_rows = _layout(
        noise_dim, num_features)

    w_slab = jnp.zeros((total_rows, w_cols), jnp.bfloat16)
    gb = jnp.zeros((gb_rows, w_cols), jnp.float32)

    for i, (w, gamma, beta) in enumerate(params["hidden"]):
        r = row_offs[i]
        w_slab = w_slab.at[r:r + w.shape[0], :w.shape[1]].set(
            w.astype(jnp.bfloat16))
        gb = gb.at[i, :gamma.shape[1]].set(gamma[0])
        gb = gb.at[N_HIDDEN + i, :beta.shape[1]].set(beta[0])

    w_final, b_final = params["final"]
    r = row_offs[N_HIDDEN]
    w_slab = w_slab.at[r:r + w_final.shape[0], :w_final.shape[1]].set(
        w_final.astype(jnp.bfloat16))
    gb = gb.at[2 * N_HIDDEN, :b_final.shape[1]].set(b_final[0])

    return {"w": w_slab, "gb": gb}


# --------------------------------------------------------------------------
# Pure-JAX references (unpadded, two-pass BN) for the correctness check.
# matmul_dtype=bf16 mirrors the kernel's MXU numerics; f32 is the exact
# PyTorch-default path (checked with a loose tolerance).
# --------------------------------------------------------------------------
def generator_reference(params, x, matmul_dtype=jnp.float32):
    h = x.astype(jnp.float32)
    for (w, gamma, beta) in params["hidden"]:
        h = jnp.dot(h.astype(matmul_dtype), w.astype(matmul_dtype),
                    preferred_element_type=jnp.float32)
        h = jnp.where(h >= 0.0, h, LEAKY_SLOPE * h)
        mean = jnp.mean(h, axis=0, keepdims=True)
        var = jnp.mean((h - mean) ** 2, axis=0, keepdims=True)
        h = (h - mean) * jax.lax.rsqrt(var + BN_EPS) * gamma + beta
    w_final, b_final = params["final"]
    return jnp.dot(h.astype(matmul_dtype), w_final.astype(matmul_dtype),
                   preferred_element_type=jnp.float32) + b_final


if __name__ == "__main__":
    noise_dim = 32
    num_features = 16
    batch = 8  # BatchNorm1d in training mode needs batch > 1

    key = jax.random.PRNGKey(0)
    key, pkey, xkey = jax.random.split(key, 3)
    params = init_generator_params(pkey, noise_dim, num_features)
    packed = pack_generator_params(params, noise_dim, num_features)
    x = jax.random.normal(xkey, (batch, noise_dim), jnp.float32)

    out = generator_forward(packed, x, num_features)
    out = jax.block_until_ready(out)
    assert out.shape == (batch, num_features), out.shape

    # Tight check against a reference with the same bf16 matmul boundary.
    ref_bf16 = generator_reference(params, x, matmul_dtype=jnp.bfloat16)
    assert jnp.allclose(out, ref_bf16, atol=5e-3, rtol=1e-2), (
        float(jnp.max(jnp.abs(out - ref_bf16))))

    # Loose sanity check against the full-f32 (PyTorch-default) path.
    ref_f32 = generator_reference(params, x, matmul_dtype=jnp.float32)
    assert jnp.allclose(out, ref_f32, atol=3e-1, rtol=0.0), (
        float(jnp.max(jnp.abs(out - ref_f32))))

    print("KERNEL_OK")
</pallas_src>

<mosaic_0001>
module attributes {stable_mosaic.version = 11 : i64} {
  func.func @kernel(%arg0: memref<8x128xf32, #tpu.memory_space<vmem>>, %arg1: memref<1664x384xbf16, #tpu.memory_space<vmem>>, %arg2: memref<24x384xf32, #tpu.memory_space<vmem>>, %arg3: memref<8x128xf32, #tpu.memory_space<vmem>>) attributes {dimension_semantics = [], scalar_prefetch = 0 : i64, scratch_operands = 0 : i64, tpu.core_type = #tpu.core_type<tc>} {
    %c0 = arith.constant 0 : index
    %c0_0 = arith.constant 0 : index
    %0 = vector.load %arg0[%c0, %c0_0] : memref<8x128xf32, #tpu.memory_space<vmem>>, vector<8x128xf32>
    %c0_1 = arith.constant 0 : index
    %c0_2 = arith.constant 0 : index
    %1 = vector.load %arg1[%c0_1, %c0_2] : memref<1664x384xbf16, #tpu.memory_space<vmem>>, vector<128x384xbf16>
    %2 = arith.truncf %0 : vector<8x128xf32> to vector<8x128xbf16>
    %cst = arith.constant dense<0.000000e+00> : vector<8x384xf32>
    %3 = tpu.matmul %2, %1, %cst {dimension_numbers = #tpu.dot_dimension_numbers<[1], [0], [0], [1], [0, 0, 1, 1], [], []>} : vector<8x128xbf16>, vector<128x384xbf16>, vector<8x384xf32> -> vector<8x384xf32>
    %cst_3 = arith.constant 0.00999999977 : f32
    %4 = vector.broadcast %cst_3 : f32 to vector<8x384xf32>
    %5 = arith.mulf %4, %3 : vector<8x384xf32>
    %6 = arith.maximumf %3, %5 : vector<8x384xf32>
    %cst_4 = arith.constant dense<0.000000e+00> : vector<384xf32>
    %7 = vector.multi_reduction <add>, %6, %cst_4 [0] : vector<8x384xf32> to vector<384xf32>
    %8 = vector.shape_cast %7 : vector<384xf32> to vector<1x384xf32>
    %9 = arith.mulf %6, %6 : vector<8x384xf32>
    %cst_5 = arith.constant dense<0.000000e+00> : vector<384xf32>
    %10 = vector.multi_reduction <add>, %9, %cst_5 [0] : vector<8x384xf32> to vector<384xf32>
    %11 = vector.shape_cast %10 : vector<384xf32> to vector<1x384xf32>
    %cst_6 = arith.constant 1.250000e-01 : f32
    %12 = vector.broadcast %cst_6 : f32 to vector<1x384xf32>
    %13 = arith.mulf %8, %12 : vector<1x384xf32>
    %cst_7 = arith.constant 1.250000e-01 : f32
    %14 = vector.broadcast %cst_7 : f32 to vector<1x384xf32>
    %15 = arith.mulf %11, %14 : vector<1x384xf32>
    %16 = arith.mulf %13, %13 : vector<1x384xf32>
    %17 = arith.subf %15, %16 : vector<1x384xf32>
    %cst_8 = arith.constant 0.000000e+00 : f32
    %18 = vector.broadcast %cst_8 : f32 to vector<1x384xf32>
    %19 = arith.maximumf %17, %18 : vector<1x384xf32>
    %c0_9 = arith.constant 0 : index
    %c0_10 = arith.constant 0 : index
    %20 = vector.load %arg2[%c0_9, %c0_10] : memref<24x384xf32, #tpu.memory_space<vmem>>, vector<1x384xf32>
    %c10 = arith.constant 10 : index
    %c0_11 = arith.constant 0 : index
    %21 = vector.load %arg2[%c10, %c0_11] : memref<24x384xf32, #tpu.memory_space<vmem>>, vector<1x384xf32>
    %cst_12 = arith.constant 9.99999974E-6 : f32
    %22 = vector.broadcast %cst_12 : f32 to vector<1x384xf32>
    %23 = arith.addf %19, %22 : vector<1x384xf32>
    %24 = math.rsqrt %23 : vector<1x384xf32>
    %25 = arith.mulf %24, %20 : vector<1x384xf32>
    %26 = arith.mulf %13, %25 : vector<1x384xf32>
    %27 = arith.subf %21, %26 : vector<1x384xf32>
    %28 = vector.broadcast %25 : vector<1x384xf32> to vector<8x384xf32>
    %29 = arith.mulf %6, %28 : vector<8x384xf32>
    %30 = vector.broadcast %27 : vector<1x384xf32> to vector<8x384xf32>
    %31 = arith.addf %29, %30 : vector<8x384xf32>
    %c128 = arith.constant 128 : index
    %c0_13 = arith.constant 0 : index
    %32 = vector.load %arg1[%c128, %c0_13] : memref<1664x384xbf16, #tpu.memory_space<vmem>>, vector<384x128xbf16>
    %33 = arith.truncf %31 : vector<8x384xf32> to vector<8x384xbf16>
    %cst_14 = arith.constant dense<0.000000e+00> : vector<8x128xf32>
    %34 = tpu.matmul %33, %32, %cst_14 {dimension_numbers = #tpu.dot_dimension_numbers<[1], [0], [0], [1], [0, 0, 1, 1], [], []>} : vector<8x384xbf16>, vector<384x128xbf16>, vector<8x128xf32> -> vector<8x128xf32>
    %cst_15 = arith.constant 0.00999999977 : f32
    %35 = vector.broadcast %cst_15 : f32 to vector<8x128xf32>
    %36 = arith.mulf %35, %34 : vector<8x128xf32>
    %37 = arith.maximumf %34, %36 : vector<8x128xf32>
    %cst_16 = arith.constant dense<0.000000e+00> : vector<128xf32>
    %38 = vector.multi_reduction <add>, %37, %cst_16 [0] : vector<8x128xf32> to vector<128xf32>
    %39 = vector.shape_cast %38 : vector<128xf32> to vector<1x128xf32>
    %40 = arith.mulf %37, %37 : vector<8x128xf32>
    %cst_17 = arith.constant dense<0.000000e+00> : vector<128xf32>
    %41 = vector.multi_reduction <add>, %40, %cst_17 [0] : vector<8x128xf32> to vector<128xf32>
    %42 = vector.shape_cast %41 : vector<128xf32> to vector<1x128xf32>
    %cst_18 = arith.constant 1.250000e-01 : f32
    %43 = vector.broadcast %cst_18 : f32 to vector<1x128xf32>
    %44 = arith.mulf %39, %43 : vector<1x128xf32>
    %cst_19 = arith.constant 1.250000e-01 : f32
    %45 = vector.broadcast %cst_19 : f32 to vector<1x128xf32>
    %46 = arith.mulf %42, %45 : vector<1x128xf32>
    %47 = arith.mulf %44, %44 : vector<1x128xf32>
    %48 = arith.subf %46, %47 : vector<1x128xf32>
    %cst_20 = arith.constant 0.000000e+00 : f32
    %49 = vector.broadcast %cst_20 : f32 to vector<1x128xf32>
    %50 = arith.maximumf %48, %49 : vector<1x128xf32>
    %c1 = arith.constant 1 : index
    %c0_21 = arith.constant 0 : index
    %51 = vector.load %arg2[%c1, %c0_21] : memref<24x384xf32, #tpu.memory_space<vmem>>, vector<1x128xf32>
    %c11 = arith.constant 11 : index
    %c0_22 = arith.constant 0 : index
    %52 = vector.load %arg2[%c11, %c0_22] : memref<24x384xf32, #tpu.memory_space<vmem>>, vector<1x128xf32>
    %cst_23 = arith.constant 9.99999974E-6 : f32
    %53 = vector.broadcast %cst_23 : f32 to vector<1x128xf32>
    %54 = arith.addf %50, %53 : vector<1x128xf32>
    %55 = math.rsqrt %54 : vector<1x128xf32>
    %56 = arith.mulf %55, %51 : vector<1x128xf32>
    %57 = arith.mulf %44, %56 : vector<1x128xf32>
    %58 = arith.subf %52, %57 : vector<1x128xf32>
    %59 = vector.broadcast %56 : vector<1x128xf32> to vector<8x128xf32>
    %60 = arith.mulf %37, %59 : vector<8x128xf32>
    %61 = vector.broadcast %58 : vector<1x128xf32> to vector<8x128xf32>
    %62 = arith.addf %60, %61 : vector<8x128xf32>
    %c512 = arith.constant 512 : index
    %c0_24 = arith.constant 0 : index
    %63 = vector.load %arg1[%c512, %c0_24] : memref<1664x384xbf16, #tpu.memory_space<vmem>>, vector<128x128xbf16>
    %64 = arith.truncf %62 : vector<8x128xf32> to vector<8x128xbf16>
    %cst_25 = arith.constant dense<0.000000e+00> : vector<8x128xf32>
    %65 = tpu.matmul %64, %63, %cst_25 {dimension_numbers = #tpu.dot_dimension_numbers<[1], [0], [0], [1], [0, 0, 1, 1], [], []>} : vector<8x128xbf16>, vector<128x128xbf16>, vector<8x128xf32> -> vector<8x128xf32>
    %cst_26 = arith.constant 0.00999999977 : f32
    %66 = vector.broadcast %cst_26 : f32 to vector<8x128xf32>
    %67 = arith.mulf %66, %65 : vector<8x128xf32>
    %68 = arith.maximumf %65, %67 : vector<8x128xf32>
    %cst_27 = arith.constant dense<0.000000e+00> : vector<128xf32>
    %69 = vector.multi_reduction <add>, %68, %cst_27 [0] : vector<8x128xf32> to vector<128xf32>
    %70 = vector.shape_cast %69 : vector<128xf32> to vector<1x128xf32>
    %71 = arith.mulf %68, %68 : vector<8x128xf32>
    %cst_28 = arith.constant dense<0.000000e+00> : vector<128xf32>
    %72 = vector.multi_reduction <add>, %71, %cst_28 [0] : vector<8x128xf32> to vector<128xf32>
    %73 = vector.shape_cast %72 : vector<128xf32> to vector<1x128xf32>
    %cst_29 = arith.constant 1.250000e-01 : f32
    %74 = vector.broadcast %cst_29 : f32 to vector<1x128xf32>
    %75 = arith.mulf %70, %74 : vector<1x128xf32>
    %cst_30 = arith.constant 1.250000e-01 : f32
    %76 = vector.broadcast %cst_30 : f32 to vector<1x128xf32>
    %77 = arith.mulf %73, %76 : vector<1x128xf32>
    %78 = arith.mulf %75, %75 : vector<1x128xf32>
    %79 = arith.subf %77, %78 : vector<1x128xf32>
    %cst_31 = arith.constant 0.000000e+00 : f32
    %80 = vector.broadcast %cst_31 : f32 to vector<1x128xf32>
    %81 = arith.maximumf %79, %80 : vector<1x128xf32>
    %c2 = arith.constant 2 : index
    %c0_32 = arith.constant 0 : index
    %82 = vector.load %arg2[%c2, %c0_32] : memref<24x384xf32, #tpu.memory_space<vmem>>, vector<1x128xf32>
    %c12 = arith.constant 12 : index
    %c0_33 = arith.constant 0 : index
    %83 = vector.load %arg2[%c12, %c0_33] : memref<24x384xf32, #tpu.memory_space<vmem>>, vector<1x128xf32>
    %cst_34 = arith.constant 9.99999974E-6 : f32
    %84 = vector.broadcast %cst_34 : f32 to vector<1x128xf32>
    %85 = arith.addf %81, %84 : vector<1x128xf32>
    %86 = math.rsqrt %85 : vector<1x128xf32>
    %87 = arith.mulf %86, %82 : vector<1x128xf32>
    %88 = arith.mulf %75, %87 : vector<1x128xf32>
    %89 = arith.subf %83, %88 : vector<1x128xf32>
    %90 = vector.broadcast %87 : vector<1x128xf32> to vector<8x128xf32>
    %91 = arith.mulf %68, %90 : vector<8x128xf32>
    %92 = vector.broadcast %89 : vector<1x128xf32> to vector<8x128xf32>
    %93 = arith.addf %91, %92 : vector<8x128xf32>
    %c640 = arith.constant 640 : index
    %c0_35 = arith.constant 0 : index
    %94 = vector.load %arg1[%c640, %c0_35] : memref<1664x384xbf16, #tpu.memory_space<vmem>>, vector<128x128xbf16>
    %95 = arith.truncf %93 : vector<8x128xf32> to vector<8x128xbf16>
    %cst_36 = arith.constant dense<0.000000e+00> : vector<8x128xf32>
    %96 = tpu.matmul %95, %94, %cst_36 {dimension_numbers = #tpu.dot_dimension_numbers<[1], [0], [0], [1], [0, 0, 1, 1], [], []>} : vector<8x128xbf16>, vector<128x128xbf16>, vector<8x128xf32> -> vector<8x128xf32>
    %cst_37 = arith.constant 0.00999999977 : f32
    %97 = vector.broadcast %cst_37 : f32 to vector<8x128xf32>
    %98 = arith.mulf %97, %96 : vector<8x128xf32>
    %99 = arith.maximumf %96, %98 : vector<8x128xf32>
    %cst_38 = arith.constant dense<0.000000e+00> : vector<128xf32>
    %100 = vector.multi_reduction <add>, %99, %cst_38 [0] : vector<8x128xf32> to vector<128xf32>
    %101 = vector.shape_cast %100 : vector<128xf32> to vector<1x128xf32>
    %102 = arith.mulf %99, %99 : vector<8x128xf32>
    %cst_39 = arith.constant dense<0.000000e+00> : vector<128xf32>
    %103 = vector.multi_reduction <add>, %102, %cst_39 [0] : vector<8x128xf32> to vector<128xf32>
    %104 = vector.shape_cast %103 : vector<128xf32> to vector<1x128xf32>
    %cst_40 = arith.constant 1.250000e-01 : f32
    %105 = vector.broadcast %cst_40 : f32 to vector<1x128xf32>
    %106 = arith.mulf %101, %105 : vector<1x128xf32>
    %cst_41 = arith.constant 1.250000e-01 : f32
    %107 = vector.broadcast %cst_41 : f32 to vector<1x128xf32>
    %108 = arith.mulf %104, %107 : vector<1x128xf32>
    %109 = arith.mulf %106, %106 : vector<1x128xf32>
    %110 = arith.subf %108, %109 : vector<1x128xf32>
    %cst_42 = arith.constant 0.000000e+00 : f32
    %111 = vector.broadcast %cst_42 : f32 to vector<1x128xf32>
    %112 = arith.maximumf %110, %111 : vector<1x128xf32>
    %c3 = arith.constant 3 : index
    %c0_43 = arith.constant 0 : index
    %113 = vector.load %arg2[%c3, %c0_43] : memref<24x384xf32, #tpu.memory_space<vmem>>, vector<1x128xf32>
    %c13 = arith.constant 13 : index
    %c0_44 = arith.constant 0 : index
    %114 = vector.load %arg2[%c13, %c0_44] : memref<24x384xf32, #tpu.memory_space<vmem>>, vector<1x128xf32>
    %cst_45 = arith.constant 9.99999974E-6 : f32
    %115 = vector.broadcast %cst_45 : f32 to vector<1x128xf32>
    %116 = arith.addf %112, %115 : vector<1x128xf32>
    %117 = math.rsqrt %116 : vector<1x128xf32>
    %118 = arith.mulf %117, %113 : vector<1x128xf32>
    %119 = arith.mulf %106, %118 : vector<1x128xf32>
    %120 = arith.subf %114, %119 : vector<1x128xf32>
    %121 = vector.broadcast %118 : vector<1x128xf32> to vector<8x128xf32>
    %122 = arith.mulf %99, %121 : vector<8x128xf32>
    %123 = vector.broadcast %120 : vector<1x128xf32> to vector<8x128xf32>
    %124 = arith.addf %122, %123 : vector<8x128xf32>
    %c768 = arith.constant 768 : index
    %c0_46 = arith.constant 0 : index
    %125 = vector.load %arg1[%c768, %c0_46] : memref<1664x384xbf16, #tpu.memory_space<vmem>>, vector<128x128xbf16>
    %126 = arith.truncf %124 : vector<8x128xf32> to vector<8x128xbf16>
    %cst_47 = arith.constant dense<0.000000e+00> : vector<8x128xf32>
    %127 = tpu.matmul %126, %125, %cst_47 {dimension_numbers = #tpu.dot_dimension_numbers<[1], [0], [0], [1], [0, 0, 1, 1], [], []>} : vector<8x128xbf16>, vector<128x128xbf16>, vector<8x128xf32> -> vector<8x128xf32>
    %cst_48 = arith.constant 0.00999999977 : f32
    %128 = vector.broadcast %cst_48 : f32 to vector<8x128xf32>
    %129 = arith.mulf %128, %127 : vector<8x128xf32>
    %130 = arith.maximumf %127, %129 : vector<8x128xf32>
    %cst_49 = arith.constant dense<0.000000e+00> : vector<128xf32>
    %131 = vector.multi_reduction <add>, %130, %cst_49 [0] : vector<8x128xf32> to vector<128xf32>
    %132 = vector.shape_cast %131 : vector<128xf32> to vector<1x128xf32>
    %133 = arith.mulf %130, %130 : vector<8x128xf32>
    %cst_50 = arith.constant dense<0.000000e+00> : vector<128xf32>
    %134 = vector.multi_reduction <add>, %133, %cst_50 [0] : vector<8x128xf32> to vector<128xf32>
    %135 = vector.shape_cast %134 : vector<128xf32> to vector<1x128xf32>
    %cst_51 = arith.constant 1.250000e-01 : f32
    %136 = vector.broadcast %cst_51 : f32 to vector<1x128xf32>
    %137 = arith.mulf %132, %136 : vector<1x128xf32>
    %cst_52 = arith.constant 1.250000e-01 : f32
    %138 = vector.broadcast %cst_52 : f32 to vector<1x128xf32>
    %139 = arith.mulf %135, %138 : vector<1x128xf32>
    %140 = arith.mulf %137, %137 : vector<1x128xf32>
    %141 = arith.subf %139, %140 : vector<1x128xf32>
    %cst_53 = arith.constant 0.000000e+00 : f32
    %142 = vector.broadcast %cst_53 : f32 to vector<1x128xf32>
    %143 = arith.maximumf %141, %142 : vector<1x128xf32>
    %c4 = arith.constant 4 : index
    %c0_54 = arith.constant 0 : index
    %144 = vector.load %arg2[%c4, %c0_54] : memref<24x384xf32, #tpu.memory_space<vmem>>, vector<1x128xf32>
    %c14 = arith.constant 14 : index
    %c0_55 = arith.constant 0 : index
    %145 = vector.load %arg2[%c14, %c0_55] : memref<24x384xf32, #tpu.memory_space<vmem>>, vector<1x128xf32>
    %cst_56 = arith.constant 9.99999974E-6 : f32
    %146 = vector.broadcast %cst_56 : f32 to vector<1x128xf32>
    %147 = arith.addf %143, %146 : vector<1x128xf32>
    %148 = math.rsqrt %147 : vector<1x128xf32>
    %149 = arith.mulf %148, %144 : vector<1x128xf32>
    %150 = arith.mulf %137, %149 : vector<1x128xf32>
    %151 = arith.subf %145, %150 : vector<1x128xf32>
    %152 = vector.broadcast %149 : vector<1x128xf32> to vector<8x128xf32>
    %153 = arith.mulf %130, %152 : vector<8x128xf32>
    %154 = vector.broadcast %151 : vector<1x128xf32> to vector<8x128xf32>
    %155 = arith.addf %153, %154 : vector<8x128xf32>
    %c896 = arith.constant 896 : index
    %c0_57 = arith.constant 0 : index
    %156 = vector.load %arg1[%c896, %c0_57] : memref<1664x384xbf16, #tpu.memory_space<vmem>>, vector<128x128xbf16>
    %157 = arith.truncf %155 : vector<8x128xf32> to vector<8x128xbf16>
    %cst_58 = arith.constant dense<0.000000e+00> : vector<8x128xf32>
    %158 = tpu.matmul %157, %156, %cst_58 {dimension_numbers = #tpu.dot_dimension_numbers<[1], [0], [0], [1], [0, 0, 1, 1], [], []>} : vector<8x128xbf16>, vector<128x128xbf16>, vector<8x128xf32> -> vector<8x128xf32>
    %cst_59 = arith.constant 0.00999999977 : f32
    %159 = vector.broadcast %cst_59 : f32 to vector<8x128xf32>
    %160 = arith.mulf %159, %158 : vector<8x128xf32>
    %161 = arith.maximumf %158, %160 : vector<8x128xf32>
    %cst_60 = arith.constant dense<0.000000e+00> : vector<128xf32>
    %162 = vector.multi_reduction <add>, %161, %cst_60 [0] : vector<8x128xf32> to vector<128xf32>
    %163 = vector.shape_cast %162 : vector<128xf32> to vector<1x128xf32>
    %164 = arith.mulf %161, %161 : vector<8x128xf32>
    %cst_61 = arith.constant dense<0.000000e+00> : vector<128xf32>
    %165 = vector.multi_reduction <add>, %164, %cst_61 [0] : vector<8x128xf32> to vector<128xf32>
    %166 = vector.shape_cast %165 : vector<128xf32> to vector<1x128xf32>
    %cst_62 = arith.constant 1.250000e-01 : f32
    %167 = vector.broadcast %cst_62 : f32 to vector<1x128xf32>
    %168 = arith.mulf %163, %167 : vector<1x128xf32>
    %cst_63 = arith.constant 1.250000e-01 : f32
    %169 = vector.broadcast %cst_63 : f32 to vector<1x128xf32>
    %170 = arith.mulf %166, %169 : vector<1x128xf32>
    %171 = arith.mulf %168, %168 : vector<1x128xf32>
    %172 = arith.subf %170, %171 : vector<1x128xf32>
    %cst_64 = arith.constant 0.000000e+00 : f32
    %173 = vector.broadcast %cst_64 : f32 to vector<1x128xf32>
    %174 = arith.maximumf %172, %173 : vector<1x128xf32>
    %c5 = arith.constant 5 : index
    %c0_65 = arith.constant 0 : index
    %175 = vector.load %arg2[%c5, %c0_65] : memref<24x384xf32, #tpu.memory_space<vmem>>, vector<1x128xf32>
    %c15 = arith.constant 15 : index
    %c0_66 = arith.constant 0 : index
    %176 = vector.load %arg2[%c15, %c0_66] : memref<24x384xf32, #tpu.memory_space<vmem>>, vector<1x128xf32>
    %cst_67 = arith.constant 9.99999974E-6 : f32
    %177 = vector.broadcast %cst_67 : f32 to vector<1x128xf32>
    %178 = arith.addf %174, %177 : vector<1x128xf32>
    %179 = math.rsqrt %178 : vector<1x128xf32>
    %180 = arith.mulf %179, %175 : vector<1x128xf32>
    %181 = arith.mulf %168, %180 : vector<1x128xf32>
    %182 = arith.subf %176, %181 : vector<1x128xf32>
    %183 = vector.broadcast %180 : vector<1x128xf32> to vector<8x128xf32>
    %184 = arith.mulf %161, %183 : vector<8x128xf32>
    %185 = vector.broadcast %182 : vector<1x128xf32> to vector<8x128xf32>
    %186 = arith.addf %184, %185 : vector<8x128xf32>
    %c1024 = arith.constant 1024 : index
    %c0_68 = arith.constant 0 : index
    %187 = vector.load %arg1[%c1024, %c0_68] : memref<1664x384xbf16, #tpu.memory_space<vmem>>, vector<128x128xbf16>
    %188 = arith.truncf %186 : vector<8x128xf32> to vector<8x128xbf16>
    %cst_69 = arith.constant dense<0.000000e+00> : vector<8x128xf32>
    %189 = tpu.matmul %188, %187, %cst_69 {dimension_numbers = #tpu.dot_dimension_numbers<[1], [0], [0], [1], [0, 0, 1, 1], [], []>} : vector<8x128xbf16>, vector<128x128xbf16>, vector<8x128xf32> -> vector<8x128xf32>
    %cst_70 = arith.constant 0.00999999977 : f32
    %190 = vector.broadcast %cst_70 : f32 to vector<8x128xf32>
    %191 = arith.mulf %190, %189 : vector<8x128xf32>
    %192 = arith.maximumf %189, %191 : vector<8x128xf32>
    %cst_71 = arith.constant dense<0.000000e+00> : vector<128xf32>
    %193 = vector.multi_reduction <add>, %192, %cst_71 [0] : vector<8x128xf32> to vector<128xf32>
    %194 = vector.shape_cast %193 : vector<128xf32> to vector<1x128xf32>
    %195 = arith.mulf %192, %192 : vector<8x128xf32>
    %cst_72 = arith.constant dense<0.000000e+00> : vector<128xf32>
    %196 = vector.multi_reduction <add>, %195, %cst_72 [0] : vector<8x128xf32> to vector<128xf32>
    %197 = vector.shape_cast %196 : vector<128xf32> to vector<1x128xf32>
    %cst_73 = arith.constant 1.250000e-01 : f32
    %198 = vector.broadcast %cst_73 : f32 to vector<1x128xf32>
    %199 = arith.mulf %194, %198 : vector<1x128xf32>
    %cst_74 = arith.constant 1.250000e-01 : f32
    %200 = vector.broadcast %cst_74 : f32 to vector<1x128xf32>
    %201 = arith.mulf %197, %200 : vector<1x128xf32>
    %202 = arith.mulf %199, %199 : vector<1x128xf32>
    %203 = arith.subf %201, %202 : vector<1x128xf32>
    %cst_75 = arith.constant 0.000000e+00 : f32
    %204 = vector.broadcast %cst_75 : f32 to vector<1x128xf32>
    %205 = arith.maximumf %203, %204 : vector<1x128xf32>
    %c6 = arith.constant 6 : index
    %c0_76 = arith.constant 0 : index
    %206 = vector.load %arg2[%c6, %c0_76] : memref<24x384xf32, #tpu.memory_space<vmem>>, vector<1x128xf32>
    %c16 = arith.constant 16 : index
    %c0_77 = arith.constant 0 : index
    %207 = vector.load %arg2[%c16, %c0_77] : memref<24x384xf32, #tpu.memory_space<vmem>>, vector<1x128xf32>
    %cst_78 = arith.constant 9.99999974E-6 : f32
    %208 = vector.broadcast %cst_78 : f32 to vector<1x128xf32>
    %209 = arith.addf %205, %208 : vector<1x128xf32>
    %210 = math.rsqrt %209 : vector<1x128xf32>
    %211 = arith.mulf %210, %206 : vector<1x128xf32>
    %212 = arith.mulf %199, %211 : vector<1x128xf32>
    %213 = arith.subf %207, %212 : vector<1x128xf32>
    %214 = vector.broadcast %211 : vector<1x128xf32> to vector<8x128xf32>
    %215 = arith.mulf %192, %214 : vector<8x128xf32>
    %216 = vector.broadcast %213 : vector<1x128xf32> to vector<8x128xf32>
    %217 = arith.addf %215, %216 : vector<8x128xf32>
    %c1152 = arith.constant 1152 : index
    %c0_79 = arith.constant 0 : index
    %218 = vector.load %arg1[%c1152, %c0_79] : memref<1664x384xbf16, #tpu.memory_space<vmem>>, vector<128x128xbf16>
    %219 = arith.truncf %217 : vector<8x128xf32> to vector<8x128xbf16>
    %cst_80 = arith.constant dense<0.000000e+00> : vector<8x128xf32>
    %220 = tpu.matmul %219, %218, %cst_80 {dimension_numbers = #tpu.dot_dimension_numbers<[1], [0], [0], [1], [0, 0, 1, 1], [], []>} : vector<8x128xbf16>, vector<128x128xbf16>, vector<8x128xf32> -> vector<8x128xf32>
    %cst_81 = arith.constant 0.00999999977 : f32
    %221 = vector.broadcast %cst_81 : f32 to vector<8x128xf32>
    %222 = arith.mulf %221, %220 : vector<8x128xf32>
    %223 = arith.maximumf %220, %222 : vector<8x128xf32>
    %cst_82 = arith.constant dense<0.000000e+00> : vector<128xf32>
    %224 = vector.multi_reduction <add>, %223, %cst_82 [0] : vector<8x128xf32> to vector<128xf32>
    %225 = vector.shape_cast %224 : vector<128xf32> to vector<1x128xf32>
    %226 = arith.mulf %223, %223 : vector<8x128xf32>
    %cst_83 = arith.constant dense<0.000000e+00> : vector<128xf32>
    %227 = vector.multi_reduction <add>, %226, %cst_83 [0] : vector<8x128xf32> to vector<128xf32>
    %228 = vector.shape_cast %227 : vector<128xf32> to vector<1x128xf32>
    %cst_84 = arith.constant 1.250000e-01 : f32
    %229 = vector.broadcast %cst_84 : f32 to vector<1x128xf32>
    %230 = arith.mulf %225, %229 : vector<1x128xf32>
    %cst_85 = arith.constant 1.250000e-01 : f32
    %231 = vector.broadcast %cst_85 : f32 to vector<1x128xf32>
    %232 = arith.mulf %228, %231 : vector<1x128xf32>
    %233 = arith.mulf %230, %230 : vector<1x128xf32>
    %234 = arith.subf %232, %233 : vector<1x128xf32>
    %cst_86 = arith.constant 0.000000e+00 : f32
    %235 = vector.broadcast %cst_86 : f32 to vector<1x128xf32>
    %236 = arith.maximumf %234, %235 : vector<1x128xf32>
    %c7 = arith.constant 7 : index
    %c0_87 = arith.constant 0 : index
    %237 = vector.load %arg2[%c7, %c0_87] : memref<24x384xf32, #tpu.memory_space<vmem>>, vector<1x128xf32>
    %c17 = arith.constant 17 : index
    %c0_88 = arith.constant 0 : index
    %238 = vector.load %arg2[%c17, %c0_88] : memref<24x384xf32, #tpu.memory_space<vmem>>, vector<1x128xf32>
    %cst_89 = arith.constant 9.99999974E-6 : f32
    %239 = vector.broadcast %cst_89 : f32 to vector<1x128xf32>
    %240 = arith.addf %236, %239 : vector<1x128xf32>
    %241 = math.rsqrt %240 : vector<1x128xf32>
    %242 = arith.mulf %241, %237 : vector<1x128xf32>
    %243 = arith.mulf %230, %242 : vector<1x128xf32>
    %244 = arith.subf %238, %243 : vector<1x128xf32>
    %245 = vector.broadcast %242 : vector<1x128xf32> to vector<8x128xf32>
    %246 = arith.mulf %223, %245 : vector<8x128xf32>
    %247 = vector.broadcast %244 : vector<1x128xf32> to vector<8x128xf32>
    %248 = arith.addf %246, %247 : vector<8x128xf32>
    %c1280 = arith.constant 1280 : index
    %c0_90 = arith.constant 0 : index
    %249 = vector.load %arg1[%c1280, %c0_90] : memref<1664x384xbf16, #tpu.memory_space<vmem>>, vector<128x128xbf16>
    %250 = arith.truncf %248 : vector<8x128xf32> to vector<8x128xbf16>
    %cst_91 = arith.constant dense<0.000000e+00> : vector<8x128xf32>
    %251 = tpu.matmul %250, %249, %cst_91 {dimension_numbers = #tpu.dot_dimension_numbers<[1], [0], [0], [1], [0, 0, 1, 1], [], []>} : vector<8x128xbf16>, vector<128x128xbf16>, vector<8x128xf32> -> vector<8x128xf32>
    %cst_92 = arith.constant 0.00999999977 : f32
    %252 = vector.broadcast %cst_92 : f32 to vector<8x128xf32>
    %253 = arith.mulf %252, %251 : vector<8x128xf32>
    %254 = arith.maximumf %251, %253 : vector<8x128xf32>
    %cst_93 = arith.constant dense<0.000000e+00> : vector<128xf32>
    %255 = vector.multi_reduction <add>, %254, %cst_93 [0] : vector<8x128xf32> to vector<128xf32>
    %256 = vector.shape_cast %255 : vector<128xf32> to vector<1x128xf32>
    %257 = arith.mulf %254, %254 : vector<8x128xf32>
    %cst_94 = arith.constant dense<0.000000e+00> : vector<128xf32>
    %258 = vector.multi_reduction <add>, %257, %cst_94 [0] : vector<8x128xf32> to vector<128xf32>
    %259 = vector.shape_cast %258 : vector<128xf32> to vector<1x128xf32>
    %cst_95 = arith.constant 1.250000e-01 : f32
    %260 = vector.broadcast %cst_95 : f32 to vector<1x128xf32>
    %261 = arith.mulf %256, %260 : vector<1x128xf32>
    %cst_96 = arith.constant 1.250000e-01 : f32
    %262 = vector.broadcast %cst_96 : f32 to vector<1x128xf32>
    %263 = arith.mulf %259, %262 : vector<1x128xf32>
    %264 = arith.mulf %261, %261 : vector<1x128xf32>
    %265 = arith.subf %263, %264 : vector<1x128xf32>
    %cst_97 = arith.constant 0.000000e+00 : f32
    %266 = vector.broadcast %cst_97 : f32 to vector<1x128xf32>
    %267 = arith.maximumf %265, %266 : vector<1x128xf32>
    %c8 = arith.constant 8 : index
    %c0_98 = arith.constant 0 : index
    %268 = vector.load %arg2[%c8, %c0_98] : memref<24x384xf32, #tpu.memory_space<vmem>>, vector<1x128xf32>
    %c18 = arith.constant 18 : index
    %c0_99 = arith.constant 0 : index
    %269 = vector.load %arg2[%c18, %c0_99] : memref<24x384xf32, #tpu.memory_space<vmem>>, vector<1x128xf32>
    %cst_100 = arith.constant 9.99999974E-6 : f32
    %270 = vector.broadcast %cst_100 : f32 to vector<1x128xf32>
    %271 = arith.addf %267, %270 : vector<1x128xf32>
    %272 = math.rsqrt %271 : vector<1x128xf32>
    %273 = arith.mulf %272, %268 : vector<1x128xf32>
    %274 = arith.mulf %261, %273 : vector<1x128xf32>
    %275 = arith.subf %269, %274 : vector<1x128xf32>
    %276 = vector.broadcast %273 : vector<1x128xf32> to vector<8x128xf32>
    %277 = arith.mulf %254, %276 : vector<8x128xf32>
    %278 = vector.broadcast %275 : vector<1x128xf32> to vector<8x128xf32>
    %279 = arith.addf %277, %278 : vector<8x128xf32>
    %c1408 = arith.constant 1408 : index
    %c0_101 = arith.constant 0 : index
    %280 = vector.load %arg1[%c1408, %c0_101] : memref<1664x384xbf16, #tpu.memory_space<vmem>>, vector<128x128xbf16>
    %281 = arith.truncf %279 : vector<8x128xf32> to vector<8x128xbf16>
    %cst_102 = arith.constant dense<0.000000e+00> : vector<8x128xf32>
    %282 = tpu.matmul %281, %280, %cst_102 {dimension_numbers = #tpu.dot_dimension_numbers<[1], [0], [0], [1], [0, 0, 1, 1], [], []>} : vector<8x128xbf16>, vector<128x128xbf16>, vector<8x128xf32> -> vector<8x128xf32>
    %cst_103 = arith.constant 0.00999999977 : f32
    %283 = vector.broadcast %cst_103 : f32 to vector<8x128xf32>
    %284 = arith.mulf %283, %282 : vector<8x128xf32>
    %285 = arith.maximumf %282, %284 : vector<8x128xf32>
    %cst_104 = arith.constant dense<0.000000e+00> : vector<128xf32>
    %286 = vector.multi_reduction <add>, %285, %cst_104 [0] : vector<8x128xf32> to vector<128xf32>
    %287 = vector.shape_cast %286 : vector<128xf32> to vector<1x128xf32>
    %288 = arith.mulf %285, %285 : vector<8x128xf32>
    %cst_105 = arith.constant dense<0.000000e+00> : vector<128xf32>
    %289 = vector.multi_reduction <add>, %288, %cst_105 [0] : vector<8x128xf32> to vector<128xf32>
    %290 = vector.shape_cast %289 : vector<128xf32> to vector<1x128xf32>
    %cst_106 = arith.constant 1.250000e-01 : f32
    %291 = vector.broadcast %cst_106 : f32 to vector<1x128xf32>
    %292 = arith.mulf %287, %291 : vector<1x128xf32>
    %cst_107 = arith.constant 1.250000e-01 : f32
    %293 = vector.broadcast %cst_107 : f32 to vector<1x128xf32>
    %294 = arith.mulf %290, %293 : vector<1x128xf32>
    %295 = arith.mulf %292, %292 : vector<1x128xf32>
    %296 = arith.subf %294, %295 : vector<1x128xf32>
    %cst_108 = arith.constant 0.000000e+00 : f32
    %297 = vector.broadcast %cst_108 : f32 to vector<1x128xf32>
    %298 = arith.maximumf %296, %297 : vector<1x128xf32>
    %c9 = arith.constant 9 : index
    %c0_109 = arith.constant 0 : index
    %299 = vector.load %arg2[%c9, %c0_109] : memref<24x384xf32, #tpu.memory_space<vmem>>, vector<1x128xf32>
    %c19 = arith.constant 19 : index
    %c0_110 = arith.constant 0 : index
    %300 = vector.load %arg2[%c19, %c0_110] : memref<24x384xf32, #tpu.memory_space<vmem>>, vector<1x128xf32>
    %cst_111 = arith.constant 9.99999974E-6 : f32
    %301 = vector.broadcast %cst_111 : f32 to vector<1x128xf32>
    %302 = arith.addf %298, %301 : vector<1x128xf32>
    %303 = math.rsqrt %302 : vector<1x128xf32>
    %304 = arith.mulf %303, %299 : vector<1x128xf32>
    %305 = arith.mulf %292, %304 : vector<1x128xf32>
    %306 = arith.subf %300, %305 : vector<1x128xf32>
    %307 = vector.broadcast %304 : vector<1x128xf32> to vector<8x128xf32>
    %308 = arith.mulf %285, %307 : vector<8x128xf32>
    %309 = vector.broadcast %306 : vector<1x128xf32> to vector<8x128xf32>
    %310 = arith.addf %308, %309 : vector<8x128xf32>
    %c1536 = arith.constant 1536 : index
    %c0_112 = arith.constant 0 : index
    %311 = vector.load %arg1[%c1536, %c0_112] : memref<1664x384xbf16, #tpu.memory_space<vmem>>, vector<128x128xbf16>
    %c20 = arith.constant 20 : index
    %c0_113 = arith.constant 0 : index
    %312 = vector.load %arg2[%c20, %c0_113] : memref<24x384xf32, #tpu.memory_space<vmem>>, vector<1x128xf32>
    %313 = arith.truncf %310 : vector<8x128xf32> to vector<8x128xbf16>
    %cst_114 = arith.constant dense<0.000000e+00> : vector<8x128xf32>
    %314 = tpu.matmul %313, %311, %cst_114 {dimension_numbers = #tpu.dot_dimension_numbers<[1], [0], [0], [1], [0, 0, 1, 1], [], []>} : vector<8x128xbf16>, vector<128x128xbf16>, vector<8x128xf32> -> vector<8x128xf32>
    %315 = vector.broadcast %312 : vector<1x128xf32> to vector<8x128xf32>
    %316 = arith.addf %314, %315 : vector<8x128xf32>
    %c0_115 = arith.constant 0 : index
    %c0_116 = arith.constant 0 : index
    %317 = vector.load %arg3[%c0_115, %c0_116] : memref<8x128xf32, #tpu.memory_space<vmem>>, vector<8x128xf32>
    tpu.vector_store %arg3[%c0_115, %c0_116], %316 {strides = array<i32>} : memref<8x128xf32, #tpu.memory_space<vmem>>, vector<8x128xf32>,
    return
  }
}

</mosaic_0001>

<bundles_post_ra>
// kernel: generator_forward.1
= control target key start
LH: loop header
LB: loop body
LE: loop exit
PB: predicated region body
PF: predicated region fallthrough
CT: control target
= control target key end

     0   :  { %8 = vsyncpa [#allocation3], 0  ;;  %s2836_s0 = inlined_call_operand.vmem [shape: f32[8,128], index: 0, kind: input, shape index: {}]   ;;  %s2837_s1 = inlined_call_operand.hbm [shape: bf16[1664,384], index: 1, kind: input, shape index: {}]   ;;  %s2838_s2 = inlined_call_operand.hbm [shape: f32[24,384], index: 2, kind: input, shape index: {}]   ;;  %s2839_s3 = inlined_call_operand.hbm [shape: f32[8,128], index: 3, kind: output, shape index: {}]  }
   0x1   :  { %9 = vsyncpa [#allocation6], 0 }
   0x2   :  { %10 = vsyncpa [#allocation4], 0  ;;  %s2635_s12 = smov [#allocation2]   ;;  %s2563_s16 = scalar_lea.hbm %s2837_s1, 39936 }
   0x3   :  { %s18_s13 = sshll.u32 %s2635_s12, 4  ;;  %p2564_p0 = scmp.ne.s32.totalorder %s2837_s1, %s2563_s16  ;;  %s19_s13 = int_to_ptr.vmem [resolvable:$true] %s18_s13 }
   0x4   :  { %p2567_p1 = scmp.lt.u32.totalorder %s2563_s16, %s2837_s1 }
   0x6   :  { %p2569_p2 = pnand %p2567_p1, %p2564_p0 }
   0x8   :  { %2572 = shalt.err (!%p2569_p2)
}
   0x9   :  { %s2573_s21 = scalar_lea.vmem %s19_s13, 39936  ;;  %p2578_p4 = scmp.lt.s32.totalorder %s19_s13, %s19_s13 }
   0xa   :  { %p2574_p3 = scmp.ne.s32.totalorder %s19_s13, %s2573_s21  ;;  %p2579_p5 = scmp.lt.s32.totalorder %s2573_s21, %s2573_s21 }
   0xc   :  { %p2580_p6 = por %p2579_p5, %p2578_p4 }
   0xe   :  { %p2581_p7 = pnand %p2580_p6, %p2574_p3 }
  0x10   :  { %2584 = shalt.err (!%p2581_p7)
}
  0x11   :  { %s2636_s22 = smov 192   ;;  %s2637_s23 = smov 12  }
  0x12   :  { %24 = dma.hbm_to_vmem [thread:$0]  %s2837_s1, 39936, %s19_s13, [#allocation3], %s2636_s22, %s2636_s22, %s2637_s23  }
  0x13   :  { %s2638_s26 = smov [#allocation5]   ;;  %s2585_s30 = scalar_lea.hbm %s2838_s2, 1152 }
  0x14   :  { %s30_s27 = sshll.u32 %s2638_s26, 4  ;;  %p2586_p8 = scmp.ne.s32.totalorder %s2838_s2, %s2585_s30  ;;  %s31_s27 = int_to_ptr.vmem [resolvable:$true] %s30_s27 }
  0x15   :  { %p2589_p9 = scmp.lt.u32.totalorder %s2585_s30, %s2838_s2 }
  0x17   :  { %p2591_p10 = pnand %p2589_p9, %p2586_p8 }
  0x19   :  { %2594 = shalt.err (!%p2591_p10)
}
  0x1a   :  { %s2595_s8 = scalar_lea.vmem %s31_s27, 1152  ;;  %p2600_p12 = scmp.lt.s32.totalorder %s31_s27, %s31_s27 }
  0x1b   :  { %p2596_p11 = scmp.ne.s32.totalorder %s31_s27, %s2595_s8  ;;  %p2601_p13 = scmp.lt.s32.totalorder %s2595_s8, %s2595_s8 }
  0x1d   :  { %p2602_p0 = por %p2601_p13, %p2600_p12 }
  0x1f   :  { %p2603_p1 = pnand %p2602_p0, %p2596_p11 }
  0x21   :  { %2606 = shalt.err (!%p2603_p1)
}
  0x22   :  { %s2639_s1 = smov 384   ;;  %s2640_s9 = smov 24  }
  0x23   :  { %36 = dma.hbm_to_vmem [thread:$0]  %s2838_s2, 1152, %s31_s27, [#allocation6], %s2639_s1, %s2639_s1, %s2640_s9  }
  0x24   :  { %2629 = dma.done.wait [#allocation3], 39936  }
  0x25   :  { %2630 = vsyncadd [#allocation3], 4294927360 }
  0x26   :  { %2631 = dma.done.wait [#allocation6], 1152  }
  0x27   :  { %2632 = vsyncadd [#allocation6], 4294966144  ;;  %v2641_v0 = vmov 0.0   ;;  %vm2642_vm0 = vmmov 0   ;;  %v2643_v1 = vmov 0   ;;  %v44_v25 = vld [vmem:[%s2836_s0] sm:$0xff] }
  0x28   :  { %2180 = vmatprep.subr.bf16.mxu1 %v2641_v0  ;;  %2196 = vmatprep.mubr.msk.bf16.mxu1 %vm2642_vm0, %v2641_v0  ;;  %v2411_v2 = vld [vmem:[#allocation2 + $0x4] ss:$12 sps:$4 sm:$0xff]   ;;  %v2413_v3 = vld [vmem:[#allocation2 + $0x8] ss:$12 sps:$4 sm:$0xff]   ;;  %v2414_v4 = vld [vmem:[#allocation2] ss:$12 sps:$4 sm:$0xff]   ;;  %v77_v27 = vpack.c.bf16 %v44_v25, %v44_v25 }
  0x29   :  { %238 = vmatprep.mubr.bf16.mxu0 %v2643_v1  ;;  %206 = vmatprep.subr.bf16.mxu0 %v2411_v2  ;;  %v2415_v5 = vld [vmem:[#allocation2 + $0x1c] ss:$12 sps:$4 sm:$0xff]   ;;  %v2417_v6 = vld [vmem:[#allocation2 + $0x20] ss:$12 sps:$4 sm:$0xff]   ;;  %v2418_v7 = vld [vmem:[#allocation2 + $0x18] ss:$12 sps:$4 sm:$0xff]  }
  0x2a   :  { %2181 = vmatpush3.bf16.msra.mxu1 %v2413_v3  ;;  %207 = vmatpush1.bf16.msra.mxu0 %v2414_v4  ;;  %v2419_v8 = vld [vmem:[#allocation2 + $0x34] ss:$12 sps:$4 sm:$0xff]   ;;  %v2421_v9 = vld [vmem:[#allocation2 + $0x38] ss:$12 sps:$4 sm:$0xff]   ;;  %v2422_v10 = vld [vmem:[#allocation2 + $0x30] ss:$12 sps:$4 sm:$0xff]  }
  0x2b   :  { %2182 = vmatprep.subr.bf16.mxu1 %v2641_v0  ;;  %208 = vmatprep.subr.bf16.mxu0 %v2415_v5  ;;  %v2423_v11 = vld [vmem:[#allocation2 + $0x4c] ss:$12 sps:$4 sm:$0xff]   ;;  %v2425_v12 = vld [vmem:[#allocation2 + $0x50] ss:$12 sps:$4 sm:$0xff]   ;;  %v2426_v13 = vld [vmem:[#allocation2 + $0x48] ss:$12 sps:$4 sm:$0xff]  }
  0x2c   :  { %v2427_v14 = vld [vmem:[#allocation2 + $0x64] ss:$12 sps:$4 sm:$0xff]   ;;  %v2429_v15 = vld [vmem:[#allocation2 + $0x68] ss:$12 sps:$4 sm:$0xff]   ;;  %v2430_v16 = vld [vmem:[#allocation2 + $0x60] ss:$12 sps:$4 sm:$0xff]  }
  0x2d   :  { %v2431_v17 = vld [vmem:[#allocation2 + $0x7c] ss:$12 sps:$4 sm:$0xff]   ;;  %v2433_v18 = vld [vmem:[#allocation2 + $0x80] ss:$12 sps:$4 sm:$0xff]   ;;  %v2434_v19 = vld [vmem:[#allocation2 + $0x78] ss:$12 sps:$4 sm:$0xff]  }
  0x2e   :  { %2183 = vmatpush3.bf16.msra.mxu1 %v2417_v6  ;;  %209 = vmatpush1.bf16.msra.mxu0 %v2418_v7  ;;  %v2435_v20 = vld [vmem:[#allocation2 + $0x94] ss:$12 sps:$4 sm:$0xff]   ;;  %v2437_v21 = vld [vmem:[#allocation2 + $0x98] ss:$12 sps:$4 sm:$0xff]   ;;  %v2438_v22 = vld [vmem:[#allocation2 + $0x90] ss:$12 sps:$4 sm:$0xff]  }
  0x2f   :  { %2184 = vmatprep.subr.bf16.mxu1 %v2641_v0  ;;  %210 = vmatprep.subr.bf16.mxu0 %v2419_v8  ;;  %v2439_v23 = vld [vmem:[#allocation2 + $0xac] ss:$12 sps:$4 sm:$0xff]   ;;  %v2441_v24 = vld [vmem:[#allocation2 + $0xb0] ss:$12 sps:$4 sm:$0xff]   ;;  %v2442_v26 = vld [vmem:[#allocation2 + $0xa8] ss:$12 sps:$4 sm:$0xff]  }
  0x30   :  { %v2443_v28 = vld [vmem:[#allocation2 + $0x180] ss:$12 sps:$4 sm:$0xff]   ;;  %v2446_v31 = vld [vmem:[#allocation2 + $0x198] ss:$12 sps:$4 sm:$0xff]   ;;  %v2449_v34 = vld [vmem:[#allocation2 + $0x1b0] ss:$12 sps:$4 sm:$0xff]  }
  0x31   :  { %v2444_v29 = vld [vmem:[#allocation2 + $0x240] ss:$12 sps:$4 sm:$0xff]   ;;  %v2447_v32 = vld [vmem:[#allocation2 + $0x258] ss:$12 sps:$4 sm:$0xff]   ;;  %v2450_v35 = vld [vmem:[#allocation2 + $0x270] ss:$12 sps:$4 sm:$0xff]  }
  0x32   :  { %2185 = vmatpush3.bf16.msra.mxu1 %v2421_v9  ;;  %211 = vmatpush1.bf16.msra.mxu0 %v2422_v10  ;;  %v2445_v30 = vld [vmem:[#allocation2 + $0xc0] ss:$12 sps:$4 sm:$0xff]   ;;  %v2448_v33 = vld [vmem:[#allocation2 + $0xd8] ss:$12 sps:$4 sm:$0xff]   ;;  %v2451_v36 = vld [vmem:[#allocation2 + $0xf0] ss:$12 sps:$4 sm:$0xff]  }
  0x33   :  { %2186 = vmatprep.subr.bf16.mxu1 %v2641_v0  ;;  %212 = vmatprep.subr.bf16.mxu0 %v2423_v11  ;;  %v2452_v37 = vld [vmem:[#allocation2 + $0x1c8] ss:$12 sps:$4 sm:$0xff]   ;;  %v2455_v40 = vld [vmem:[#allocation2 + $0x1e0] ss:$12 sps:$4 sm:$0xff]   ;;  %v2458_v43 = vld [vmem:[#allocation2 + $0x1f8] ss:$12 sps:$4 sm:$0xff]  }
  0x34   :  { %v2453_v38 = vld [vmem:[#allocation2 + $0x288] ss:$12 sps:$4 sm:$0xff]   ;;  %v2456_v41 = vld [vmem:[#allocation2 + $0x2a0] ss:$12 sps:$4 sm:$0xff]   ;;  %v2459_v44 = vld [vmem:[#allocation2 + $0x2b8] ss:$12 sps:$4 sm:$0xff]  }
  0x35   :  { %v2454_v39 = vld [vmem:[#allocation2 + $0x108] ss:$12 sps:$4 sm:$0xff]   ;;  %v2457_v42 = vld [vmem:[#allocation2 + $0x120] ss:$12 sps:$4 sm:$0xff]   ;;  %v2460_v45 = vld [vmem:[#allocation2 + $0x138] ss:$12 sps:$4 sm:$0xff]  }
  0x36   :  { %2187 = vmatpush3.bf16.msra.mxu1 %v2425_v12  ;;  %213 = vmatpush1.bf16.msra.mxu0 %v2426_v13  ;;  %v2461_v46 = vld [vmem:[#allocation2 + $0x210] ss:$12 sps:$4 sm:$0xff]   ;;  %v2464_v49 = vld [vmem:[#allocation2 + $0x228] ss:$12 sps:$4 sm:$0xff]   ;;  %s2645_s0 = smov [#allocation7]  }
  0x37   :  { %2188 = vmatprep.subr.bf16.mxu1 %v2641_v0  ;;  %214 = vmatprep.subr.bf16.mxu0 %v2427_v14  ;;  %v2462_v47 = vld [vmem:[#allocation2 + $0x2d0] ss:$12 sps:$4 sm:$0xff]   ;;  %v2465_v50 = vld [vmem:[#allocation2 + $0x2e8] ss:$12 sps:$4 sm:$0xff]   ;;  %s1929_s13 = sshll.u32 %s2645_s0, 4  ;;  %s1930_s13 = int_to_ptr.vmem [resolvable:$true] %s1929_s13 }
  0x38   :  { %v2463_v48 = vld [vmem:[#allocation2 + $0x150] ss:$12 sps:$4 sm:$0xff]   ;;  %v2466_v51 = vld [vmem:[#allocation2 + $0x168] ss:$12 sps:$4 sm:$0xff]   ;;  %s2607_s14 = scalar_lea.vmem %s1930_s13, 128  ;;  %p2612_p3 = scmp.lt.s32.totalorder %s1930_s13, %s1930_s13 }
  0x39   :  { %p2608_p2 = scmp.ne.s32.totalorder %s1930_s13, %s2607_s14  ;;  %p2613_p4 = scmp.lt.s32.totalorder %s2607_s14, %s2607_s14 }
  0x3a   :  { %2189 = vmatpush3.bf16.msra.mxu1 %v2429_v15  ;;  %215 = vmatpush1.bf16.msra.mxu0 %v2430_v16 }
  0x3b   :  { %2190 = vmatprep.subr.bf16.mxu1 %v2641_v0  ;;  %216 = vmatprep.subr.bf16.mxu0 %v2431_v17  ;;  %p2614_p5 = por %p2613_p4, %p2612_p3 }
  0x3d   :  { %p2615_p6 = pnand %p2614_p5, %p2608_p2 }
  0x3e   :  { %2191 = vmatpush3.bf16.msra.mxu1 %v2433_v18  ;;  %217 = vmatpush1.bf16.msra.mxu0 %v2434_v19 }
  0x3f   :  { %2192 = vmatprep.subr.bf16.mxu1 %v2641_v0  ;;  %218 = vmatprep.subr.bf16.mxu0 %v2435_v20 }
  0x42   :  { %2193 = vmatpush3.bf16.msra.mxu1 %v2437_v21  ;;  %219 = vmatpush1.bf16.msra.mxu0 %v2438_v22 }
  0x43   :  { %2194 = vmatprep.subr.bf16.mxu1 %v2641_v0  ;;  %220 = vmatprep.subr.bf16.mxu0 %v2439_v23 }
  0x46   :  { %2195 = vmatpush3.bf16.msra.mxu1 %v2441_v24  ;;  %221 = vmatpush1.bf16.msra.mxu0 %v2442_v26 }
  0x47   :  { %2200 = vmatprep.subr.bf16.mxu1 %v2641_v0  ;;  %2068 = vmatprep.subr.bf16.mxu0 %v2443_v28 }
  0x49   :  { %2197 = vmatmul.mubr.bf16.vlgmr.msra.gmra.mrb[0].mxu1 %v77_v27  ;;  %239 = vmatmul.mubr.bf16.vlgmr.msra.gmra.mrb[0].mxu0 %v77_v27 }
  0x4a   :  { %2216 = vmatprep.mubr.msk.bf16.mxu1 %vm2642_vm0, %v2641_v0  ;;  %2201 = vmatpush3.bf16.msra.mxu1 %v2444_v29 }
  0x4b   :  { %2069 = vmatpush3.bf16.msra.mxu0 %v2445_v30  ;;  %2202 = vmatprep.subr.bf16.mxu1 %v2641_v0 }
  0x4c   :  { %2070 = vmatprep.subr.bf16.mxu0 %v2446_v31 }
  0x4e   :  { %2203 = vmatpush3.bf16.msra.mxu1 %v2447_v32 }
  0x4f   :  { %2071 = vmatpush3.bf16.msra.mxu0 %v2448_v33  ;;  %2204 = vmatprep.subr.bf16.mxu1 %v2641_v0 }
  0x50   :  { %2072 = vmatprep.subr.bf16.mxu0 %v2449_v34 }
  0x52   :  { %2205 = vmatpush3.bf16.msra.mxu1 %v2450_v35 }
  0x53   :  { %2073 = vmatpush3.bf16.msra.mxu0 %v2451_v36  ;;  %2206 = vmatprep.subr.bf16.mxu1 %v2641_v0 }
  0x54   :  { %2074 = vmatprep.subr.bf16.mxu0 %v2452_v37 }
  0x56   :  { %2207 = vmatpush3.bf16.msra.mxu1 %v2453_v38 }
  0x57   :  { %2075 = vmatpush3.bf16.msra.mxu0 %v2454_v39  ;;  %2208 = vmatprep.subr.bf16.mxu1 %v2641_v0 }
  0x58   :  { %2076 = vmatprep.subr.bf16.mxu0 %v2455_v40 }
  0x5a   :  { %2209 = vmatpush3.bf16.msra.mxu1 %v2456_v41 }
  0x5b   :  { %2077 = vmatpush3.bf16.msra.mxu0 %v2457_v42  ;;  %2210 = vmatprep.subr.bf16.mxu1 %v2641_v0 }
  0x5c   :  { %2078 = vmatprep.subr.bf16.mxu0 %v2458_v43 }
  0x5e   :  { %2211 = vmatpush3.bf16.msra.mxu1 %v2459_v44 }
  0x5f   :  { %2079 = vmatpush3.bf16.msra.mxu0 %v2460_v45  ;;  %2212 = vmatprep.subr.bf16.mxu1 %v2641_v0 }
  0x60   :  { %2080 = vmatprep.subr.bf16.mxu0 %v2461_v46 }
  0x62   :  { %2213 = vmatpush3.bf16.msra.mxu1 %v2462_v47 }
  0x63   :  { %2081 = vmatpush3.bf16.msra.mxu0 %v2463_v48  ;;  %2214 = vmatprep.subr.bf16.mxu1 %v2641_v0 }
  0x64   :  { %2082 = vmatprep.subr.bf16.mxu0 %v2464_v49 }
  0x66   :  { %2215 = vmatpush3.bf16.msra.mxu1 %v2465_v50 }
  0x67   :  { %2083 = vmatpush3.bf16.msra.mxu0 %v2466_v51  ;;  %2240 = vmatprep.subr.bf16.mxu1 %v2641_v0 }
  0x68   :  { %2220 = vmatprep.subr.bf16.mxu0 %v2641_v0 }
 0x11c   :  { %v281_v52 = vpop.f32.mrb[0].mxu1  ;;  %v240_v54 = vpop.f32.mrb[0].mxu0 }
 0x11d   :  { %v289_v53 = vmul.f32 0.01, %v281_v52  ;;  %v2198_v55 = vpop.f32.mrb[1].mxu1  ;;  %v287_v56 = vmul.f32 0.01, %v240_v54  ;;  %v242_v57 = vpop.f32.mrb[1].mxu0 }
 0x11e   :  { %v284_v58 = vpop.f32.mrb[2].mxu1  ;;  %v288_v60 = vmul.f32 0.01, %v242_v57  ;;  %v244_v61 = vpop.f32.mrb[2].mxu0 }
 0x11f   :  { %v2715_v59 = vmax.f32 %v281_v52, %v289_v53  ;;  %v2199_v62 = vpop.f32.mrb[3].mxu1  ;;  %v2717_v63 = vmax.f32 %v240_v54, %v287_v56  ;;  %v245_v1 = vpop.f32.mrb[3].mxu0  ;;  %v357_v52 = vlaneseq }
 0x120   :  { %v2722_v4 = vmax.f32 %v242_v57, %v288_v60 }
 0x121   :  { %v305_v2 = vrot.slane %v2715_v59, 4  ;;  %v313_v3 = vmul.f32 %v2715_v59, %v2715_v59  ;;  %v293_v5 = vrot.slane %v2717_v63, 4  ;;  %v311_v6 = vmul.f32 %v2717_v63, %v2717_v63 }
 0x122   :  { %v299_v9 = vrot.slane %v2722_v4, 4  ;;  %v312_v10 = vmul.f32 %v2722_v4, %v2722_v4  ;;  %v358_v60 = vshrl.u32 %v357_v52, 7 }
 0x123   :  { %v306_v7 = vadd.f32 %v305_v2, %v2715_v59  ;;  %v326_v8 = vrot.slane %v313_v3, 4  ;;  %v294_v11 = vadd.f32 %v293_v5, %v2717_v63  ;;  %v314_v12 = vrot.slane %v311_v6, 4  ;;  %v347_v2 = vld [vmem:[#allocation5] ss:$8 sm:$0x7] }
 0x124   :  { %v300_v15 = vadd.f32 %v299_v9, %v2722_v4  ;;  %v320_v16 = vrot.slane %v312_v10, 4  ;;  %v367_v1 = vsub.s32 2, %v358_v60  ;;  %v363_v5 = vsub.s32 1, %v358_v60 }
 0x125   :  { %v307_v13 = vrot.slane %v306_v7, 2  ;;  %v327_v14 = vadd.f32 %v326_v8, %v313_v3  ;;  %v295_v17 = vrot.slane %v294_v11, 2  ;;  %v315_v18 = vadd.f32 %v314_v12, %v311_v6 }
 0x126   :  { %v301_v21 = vrot.slane %v300_v15, 2  ;;  %v321_v22 = vadd.f32 %v320_v16, %v312_v10  ;;  %v359_v3 = vsub.s32 0, %v358_v60  ;;  %v368_v6 = vrot.slane %v347_v2, %v367_v1 }
 0x127   :  { %v308_v19 = vadd.f32 %v307_v13, %v306_v7  ;;  %v328_v20 = vrot.slane %v327_v14, 2  ;;  %v296_v23 = vadd.f32 %v295_v17, %v294_v11  ;;  %v316_v24 = vrot.slane %v315_v18, 2 }
 0x128   :  { %v302_v27 = vadd.f32 %v301_v21, %v300_v15  ;;  %v322_v28 = vrot.slane %v321_v22, 2  ;;  %v2644_v7 = vmov 1966171168   ;;  %v360_v9 = vrot.slane %v347_v2, %v359_v3 }
 0x129   :  { %v309_v25 = vrot.slane %v308_v19, 1  ;;  %v329_v26 = vadd.f32 %v328_v20, %v327_v14  ;;  %v297_v29 = vrot.slane %v296_v23, 1  ;;  %v317_v30 = vadd.f32 %v316_v24, %v315_v18 }
 0x12a   :  { %v303_v33 = vrot.slane %v302_v27, 1  ;;  %v323_v34 = vadd.f32 %v322_v28, %v321_v22  ;;  %v383_v8 = vunpack.c.l.s4 %v2644_v7  ;;  %v364_v10 = vrot.slane %v347_v2, %v363_v5  ;;  %v349_v28 = vld [vmem:[#allocation5 + $0x1a] ss:$8 sm:$0x7] }
 0x12b   :  { %v310_v31 = vadd.f32 %v309_v25, %v308_v19  ;;  %v330_v32 = vrot.slane %v329_v26, 1  ;;  %v298_v35 = vadd.f32 %v297_v29, %v296_v23  ;;  %v318_v36 = vrot.slane %v317_v30, 1 }
 0x12c   :  { %v304_v39 = vadd.f32 %v303_v33, %v302_v27  ;;  %v324_v40 = vrot.slane %v323_v34, 1  ;;  %v384_v14 = vunpack.c.0.s8 %v383_v8 }
 0x12d   :  { %v331_v37 = vadd.f32 %v330_v32, %v329_v26  ;;  %v334_v38 = vmul.f32 0.125, %v310_v31  ;;  %v319_v41 = vadd.f32 %v318_v36, %v317_v30  ;;  %v332_v42 = vmul.f32 0.125, %v298_v35 }
 0x12e   :  { %v325_v45 = vadd.f32 %v324_v40, %v323_v34  ;;  %v333_v46 = vmul.f32 0.125, %v304_v39  ;;  %v387_v21 = vsub.s32 %v384_v14, %v358_v60 }
 0x12f   :  { %v337_v43 = vmul.f32 0.125, %v331_v37  ;;  %v340_v44 = vmul.f32 %v334_v38, %v334_v38  ;;  %v335_v47 = vmul.f32 0.125, %v319_v41  ;;  %v338_v48 = vmul.f32 %v332_v42, %v332_v42 }
 0x130   :  { %v336_v50 = vmul.f32 0.125, %v325_v45  ;;  %v339_v51 = vmul.f32 %v333_v46, %v333_v46  ;;  %v2471_v45 = vld [vmem:[#allocation2 + $0x360] ss:$12 sps:$4 sm:$0xff]  }
 0x131   :  { %v343_v49 = vsub.f32 %v337_v43, %v340_v44  ;;  %v341_v53 = vsub.f32 %v335_v47, %v338_v48  ;;  %v2470_v44 = vld [vmem:[#allocation2 + $0x348] ss:$12 sps:$4 sm:$0xff]   ;;  %v2473_v47 = vld [vmem:[#allocation2 + $0x390] ss:$12 sps:$4 sm:$0xff]  }
 0x132   :  { %v342_v55 = vsub.f32 %v336_v50, %v339_v51  ;;  %v2474_v48 = vld [vmem:[#allocation2 + $0x3a8] ss:$12 sps:$4 sm:$0xff]  }
 0x133   :  { %v346_v54 = vmax.f32 %v343_v49, 0.0  ;;  %v344_v56 = vmax.f32 %v341_v53, 0.0 }
 0x134   :  { %v345_v58 = vmax.f32 %v342_v55, 0.0 }
 0x135   :  { %v352_v57 = vadd.f32 1e-05, %v346_v54  ;;  %v350_v61 = vadd.f32 1e-05, %v344_v56 }
 0x136   :  { %v351_v62 = vadd.f32 1e-05, %v345_v58 }
 0x137   :  { %2539 = vrsqrt.f32 %v352_v57 }
 0x138   :  { %2541 = vrsqrt.f32 %v350_v61 }
 0x139   :  { %2543 = vrsqrt.f32 %v351_v62 }
 0x141   :  { %v2540_v11 = vpop.eup %2539 }
 0x142   :  { %v2542_v12 = vpop.eup %2541  ;;  %v374_v13 = vmul.f32 %v2540_v11, %v368_v6 }
 0x143   :  { %v2544_v15 = vpop.eup %2543  ;;  %v372_v16 = vmul.f32 %v2542_v12, %v360_v9 }
 0x144   :  { %v373_v17 = vmul.f32 %v2544_v15, %v364_v10  ;;  %v377_v19 = vmul.f32 %v374_v13, %v334_v38  ;;  %v417_v26 = vrot.slane %v374_v13, %v359_v3 }
 0x145   :  { %v375_v18 = vmul.f32 %v372_v16, %v332_v42  ;;  %v409_v27 = vrot.slane %v372_v16, %v359_v3 }
 0x146   :  { %v376_v20 = vmul.f32 %v373_v17, %v333_v46  ;;  %v395_v24 = vrot.slane %v377_v19, %v387_v21  ;;  %v413_v30 = vrot.slane %v373_v17, %v359_v3  ;;  %v420_v32 = vmul.f32 %v417_v26, %v2715_v59  ;;  %v2467_v59 = vld [vmem:[#allocation2 + $0x300] ss:$12 sps:$4 sm:$0xff]   ;;  %v2472_v46 = vld [vmem:[#allocation2 + $0x378] ss:$12 sps:$4 sm:$0xff]  }
 0x147   :  { %v418_v33 = vmul.f32 %v409_v27, %v2717_v63  ;;  %v2468_v63 = vld [vmem:[#allocation2 + $0x318] ss:$12 sps:$4 sm:$0xff]  }
 0x148   :  { %v381_v22 = vcombine.low %v375_v18, %v376_v20  ;;  %v419_v34 = vmul.f32 %v413_v30, %v2722_v4  ;;  %v2469_v4 = vld [vmem:[#allocation2 + $0x330] ss:$12 sps:$4 sm:$0xff]   ;;  %v735_v20 = vld [vmem:[#allocation5 + $0x1] ss:$0 sm:$0xff]  ;;  %v2476_v30 = vld [vmem:[#allocation2 + $0x3d8] ss:$12 sps:$4 sm:$0xff]  }
 0x14a   :  { %v388_v23 = vrot.slane %v381_v22, %v387_v21 }
 0x14c   :  { %v396_v25 = vcombine.low %v388_v23, %v395_v24  ;;  %v736_v23 = vld [vmem:[#allocation5 + $0x1b] ss:$0 sm:$0xff] }
 0x14e   :  { %v403_v29 = vrot.slane %v396_v25, %v387_v21 }
 0x150   :  { %v405_v31 = vsub.f32 %v349_v28, %v403_v29  ;;  %v2475_v29 = vld [vmem:[#allocation2 + $0x3c0] ss:$12 sps:$4 sm:$0xff]  }
 0x152   :  { %v429_v35 = vrot.slane %v405_v31, %v363_v5  ;;  %v433_v36 = vrot.slane %v405_v31, %v367_v1  ;;  %v425_v37 = vrot.slane %v405_v31, %v359_v3  ;;  %v2477_v31 = vld [vmem:[#allocation2 + $0x3f0] ss:$12 sps:$4 sm:$0xff]  }
 0x154   :  { %v438_v38 = vadd.f32 %v429_v35, %v419_v34  ;;  %v439_v39 = vadd.f32 %v433_v36, %v420_v32  ;;  %v437_v40 = vadd.f32 %v425_v37, %v418_v33  ;;  %v2478_v32 = vld [vmem:[#allocation2 + $0x408] ss:$12 sps:$4 sm:$0xff]   ;;  %v2479_v33 = vld [vmem:[#allocation2 + $0x420] ss:$12 sps:$4 sm:$0xff]   ;;  %v2480_v34 = vld [vmem:[#allocation2 + $0x438] ss:$12 sps:$4 sm:$0xff]  }
 0x155   :  { %v2481_v35 = vld [vmem:[#allocation2 + $0x450] ss:$12 sps:$4 sm:$0xff]   ;;  %v2482_v36 = vld [vmem:[#allocation2 + $0x468] ss:$12 sps:$4 sm:$0xff]  }
 0x156   :  { %v489_v41 = vpack.c.bf16 %v438_v38, %v438_v38  ;;  %v490_v42 = vpack.c.bf16 %v439_v39, %v439_v39  ;;  %v488_v43 = vpack.c.bf16 %v437_v40, %v437_v40 }
 0x158   :  { %667 = vmatprep.mubr.bf16.mxu0 %v489_v41  ;;  %2217 = vmatmul.mubr.bf16.vlgmr.msra.gmra.mrb[4].mxu1 %v490_v42 }
 0x159   :  { %668 = vmatmul.mubr.bf16.vlgmr.msra.gmra.mrb[4].mxu0 %v488_v43  ;;  %2256 = vmatprep.mubr.msk.bf16.mxu1 %vm2642_vm0, %v2641_v0 }
 0x15a   :  { %2236 = vmatprep.mubr.msk.bf16.mxu0 %vm2642_vm0, %v2641_v0  ;;  %2221 = vmatpush3.bf16.msra.mxu0 %v2467_v59 }
 0x15b   :  { %2222 = vmatprep.subr.bf16.mxu0 %v2641_v0  ;;  %2241 = vmatpush3.bf16.msra.mxu1 %v2475_v29 }
 0x15c   :  { %2242 = vmatprep.subr.bf16.mxu1 %v2641_v0 }
 0x15e   :  { %2223 = vmatpush3.bf16.msra.mxu0 %v2468_v63 }
 0x15f   :  { %2224 = vmatprep.subr.bf16.mxu0 %v2641_v0  ;;  %2243 = vmatpush3.bf16.msra.mxu1 %v2476_v30 }
 0x160   :  { %2244 = vmatprep.subr.bf16.mxu1 %v2641_v0 }
 0x162   :  { %2225 = vmatpush3.bf16.msra.mxu0 %v2469_v4 }
 0x163   :  { %2226 = vmatprep.subr.bf16.mxu0 %v2641_v0  ;;  %2245 = vmatpush3.bf16.msra.mxu1 %v2477_v31 }
 0x164   :  { %2246 = vmatprep.subr.bf16.mxu1 %v2641_v0 }
 0x166   :  { %2227 = vmatpush3.bf16.msra.mxu0 %v2470_v44 }
 0x167   :  { %2228 = vmatprep.subr.bf16.mxu0 %v2641_v0  ;;  %2247 = vmatpush3.bf16.msra.mxu1 %v2478_v32 }
 0x168   :  { %2248 = vmatprep.subr.bf16.mxu1 %v2641_v0 }
 0x16a   :  { %2229 = vmatpush3.bf16.msra.mxu0 %v2471_v45 }
 0x16b   :  { %2230 = vmatprep.subr.bf16.mxu0 %v2641_v0  ;;  %2249 = vmatpush3.bf16.msra.mxu1 %v2479_v33 }
 0x16c   :  { %2250 = vmatprep.subr.bf16.mxu1 %v2641_v0 }
 0x16e   :  { %2231 = vmatpush3.bf16.msra.mxu0 %v2472_v46 }
 0x16f   :  { %2232 = vmatprep.subr.bf16.mxu0 %v2641_v0  ;;  %2251 = vmatpush3.bf16.msra.mxu1 %v2480_v34 }
 0x170   :  { %2252 = vmatprep.subr.bf16.mxu1 %v2641_v0 }
 0x172   :  { %2233 = vmatpush3.bf16.msra.mxu0 %v2473_v47 }
 0x173   :  { %2234 = vmatprep.subr.bf16.mxu0 %v2641_v0  ;;  %2253 = vmatpush3.bf16.msra.mxu1 %v2481_v35 }
 0x174   :  { %2254 = vmatprep.subr.bf16.mxu1 %v2641_v0 }
 0x176   :  { %2235 = vmatpush3.bf16.msra.mxu0 %v2474_v48 }
 0x177   :  { %2260 = vmatprep.subr.bf16.mxu0 %v2641_v0  ;;  %2255 = vmatpush3.bf16.msra.mxu1 %v2482_v36 }
 0x178   :  { %2280 = vmatprep.subr.bf16.mxu1 %v2641_v0 }
 0x22b   :  { %v709_v49 = vpop.f32.mrb[4].mxu1 }
 0x22c   :  { %v2084_v50 = vpop.f32.mrb[4].mxu0  ;;  %v2218_v51 = vpop.f32.mrb[5].mxu1 }
 0x22d   :  { %v2085_v52 = vpop.f32.mrb[5].mxu0  ;;  %v712_v53 = vpop.f32.mrb[6].mxu1 }
 0x22e   :  { %v2086_v54 = vadd.f32 %v2085_v52, %v2084_v50  ;;  %v2087_v55 = vpop.f32.mrb[6].mxu0  ;;  %v2219_v56 = vpop.f32.mrb[7].mxu1 }
 0x22f   :  { %v2088_v57 = vpop.f32.mrb[7].mxu0 }
 0x230   :  { %v710_v58 = vadd.f32 %v2086_v54, %v709_v49 }
 0x232   :  { %v715_v60 = vmul.f32 0.01, %v710_v58 }
 0x234   :  { %v716_v61 = vmax.f32 %v710_v58, %v715_v60  ;;  %v869_v60 = vld [vmem:[#allocation5 + $0x2] ss:$0 sm:$0xff] }
 0x236   :  { %v717_v62 = vrot.slane %v716_v61, 4  ;;  %v723_v1 = vmul.f32 %v716_v61, %v716_v61 }
 0x238   :  { %v718_v2 = vadd.f32 %v717_v62, %v716_v61  ;;  %v724_v3 = vrot.slane %v723_v1, 4 }
 0x23a   :  { %v719_v5 = vrot.slane %v718_v2, 2  ;;  %v725_v6 = vadd.f32 %v724_v3, %v723_v1  ;;  %v870_v1 = vld [vmem:[#allocation5 + $0x1c] ss:$0 sm:$0xff] }
 0x23c   :  { %v720_v7 = vadd.f32 %v719_v5, %v718_v2  ;;  %v726_v8 = vrot.slane %v725_v6, 2 }
 0x23e   :  { %v727_v9 = vadd.f32 %v726_v8, %v725_v6  ;;  %v721_v10 = vrot.slane %v720_v7, 1  ;;  %v2483_v8 = vld [vmem:[#allocation2 + $0x480] ss:$12 sps:$4 sm:$0xff]  }
 0x240   :  { %v728_v11 = vrot.slane %v727_v9, 1  ;;  %v722_v12 = vadd.f32 %v721_v10, %v720_v7  ;;  %v2485_v10 = vld [vmem:[#allocation2 + $0x4b0] ss:$12 sps:$4 sm:$0xff]  }
 0x242   :  { %v729_v13 = vadd.f32 %v728_v11, %v727_v9  ;;  %v730_v14 = vmul.f32 0.125, %v722_v12  ;;  %v2484_v9 = vld [vmem:[#allocation2 + $0x498] ss:$12 sps:$4 sm:$0xff]   ;;  %v2486_v11 = vld [vmem:[#allocation2 + $0x4c8] ss:$12 sps:$4 sm:$0xff]  }
 0x243   :  { %v2487_v12 = vld [vmem:[#allocation2 + $0x4e0] ss:$12 sps:$4 sm:$0xff]  }
 0x244   :  { %v731_v15 = vmul.f32 0.125, %v729_v13  ;;  %v732_v16 = vmul.f32 %v730_v14, %v730_v14  ;;  %v2488_v13 = vld [vmem:[#allocation2 + $0x4f8] ss:$12 sps:$4 sm:$0xff]  }
 0x246   :  { %v733_v17 = vsub.f32 %v731_v15, %v732_v16  ;;  %v2490_v15 = vld [vmem:[#allocation2 + $0x528] ss:$12 sps:$4 sm:$0xff]  }
 0x248   :  { %v734_v18 = vmax.f32 %v733_v17, 0.0 }
 0x24a   :  { %v737_v19 = vadd.f32 1e-05, %v734_v18 }
 0x24c   :  { %2545 = vrsqrt.f32 %v737_v19 }
 0x256   :  { %v2546_v21 = vpop.eup %2545 }
 0x257   :  { %v739_v22 = vmul.f32 %v2546_v21, %v735_v20 }
 0x259   :  { %v740_v24 = vmul.f32 %v739_v22, %v730_v14  ;;  %v742_v26 = vmul.f32 %v739_v22, %v716_v61  ;;  %v2489_v14 = vld [vmem:[#allocation2 + $0x510] ss:$12 sps:$4 sm:$0xff]  }
 0x25b   :  { %v741_v25 = vsub.f32 %v736_v23, %v740_v24 }
 0x25d   :  { %v743_v27 = vadd.f32 %v742_v26, %v741_v25 }
 0x25f   :  { %v760_v28 = vpack.c.bf16 %v743_v27, %v743_v27 }
 0x261   :  { %2237 = vmatmul.mubr.bf16.vlgmr.msra.gmra.mrb[8].mxu0 %v760_v28 }
 0x262   :  { %2276 = vmatprep.mubr.msk.bf16.mxu0 %vm2642_vm0, %v2641_v0  ;;  %2261 = vmatpush3.bf16.msra.mxu0 %v2483_v8 }
 0x263   :  { %2262 = vmatprep.subr.bf16.mxu0 %v2641_v0 }
 0x266   :  { %2263 = vmatpush3.bf16.msra.mxu0 %v2484_v9 }
 0x267   :  { %2264 = vmatprep.subr.bf16.mxu0 %v2641_v0 }
 0x26a   :  { %2265 = vmatpush3.bf16.msra.mxu0 %v2485_v10 }
 0x26b   :  { %2266 = vmatprep.subr.bf16.mxu0 %v2641_v0 }
 0x26e   :  { %2267 = vmatpush3.bf16.msra.mxu0 %v2486_v11 }
 0x26f   :  { %2268 = vmatprep.subr.bf16.mxu0 %v2641_v0 }
 0x272   :  { %2269 = vmatpush3.bf16.msra.mxu0 %v2487_v12 }
 0x273   :  { %2270 = vmatprep.subr.bf16.mxu0 %v2641_v0 }
 0x276   :  { %2271 = vmatpush3.bf16.msra.mxu0 %v2488_v13 }
 0x277   :  { %2272 = vmatprep.subr.bf16.mxu0 %v2641_v0 }
 0x27a   :  { %2273 = vmatpush3.bf16.msra.mxu0 %v2489_v14 }
 0x27b   :  { %2274 = vmatprep.subr.bf16.mxu0 %v2641_v0 }
 0x27e   :  { %2275 = vmatpush3.bf16.msra.mxu0 %v2490_v15 }
 0x27f   :  { %2300 = vmatprep.subr.bf16.mxu0 %v2641_v0 }
 0x334   :  { %v843_v37 = vpop.f32.mrb[8].mxu0 }
 0x335   :  { %v849_v38 = vmul.f32 0.01, %v843_v37  ;;  %v2238_v39 = vpop.f32.mrb[9].mxu0 }
 0x336   :  { %v846_v40 = vpop.f32.mrb[10].mxu0 }
 0x337   :  { %v850_v41 = vmax.f32 %v843_v37, %v849_v38  ;;  %v2239_v42 = vpop.f32.mrb[11].mxu0 }
 0x339   :  { %v851_v43 = vrot.slane %v850_v41, 4  ;;  %v857_v59 = vmul.f32 %v850_v41, %v850_v41 }
 0x33b   :  { %v852_v63 = vadd.f32 %v851_v43, %v850_v41  ;;  %v858_v4 = vrot.slane %v857_v59, 4 }
 0x33d   :  { %v853_v44 = vrot.slane %v852_v63, 2  ;;  %v859_v45 = vadd.f32 %v858_v4, %v857_v59  ;;  %v1004_v59 = vld [vmem:[#allocation5 + $0x1d] ss:$0 sm:$0xff] }
 0x33f   :  { %v854_v46 = vadd.f32 %v853_v44, %v852_v63  ;;  %v860_v47 = vrot.slane %v859_v45, 2 }
 0x341   :  { %v855_v48 = vrot.slane %v854_v46, 1  ;;  %v861_v49 = vadd.f32 %v860_v47, %v859_v45  ;;  %v2491_v47 = vld [vmem:[#allocation2 + $0x540] ss:$12 sps:$4 sm:$0xff]  }
 0x343   :  { %v856_v50 = vadd.f32 %v855_v48, %v854_v46  ;;  %v862_v51 = vrot.slane %v861_v49, 1  ;;  %v2492_v48 = vld [vmem:[#allocation2 + $0x558] ss:$12 sps:$4 sm:$0xff]  }
 0x345   :  { %v863_v52 = vadd.f32 %v862_v51, %v861_v49  ;;  %v864_v53 = vmul.f32 0.125, %v856_v50  ;;  %v2493_v49 = vld [vmem:[#allocation2 + $0x570] ss:$12 sps:$4 sm:$0xff]   ;;  %v2494_v50 = vld [vmem:[#allocation2 + $0x588] ss:$12 sps:$4 sm:$0xff]  }
 0x346   :  { %v2495_v51 = vld [vmem:[#allocation2 + $0x5a0] ss:$12 sps:$4 sm:$0xff]  }
 0x347   :  { %v865_v54 = vmul.f32 0.125, %v863_v52  ;;  %v866_v55 = vmul.f32 %v864_v53, %v864_v53  ;;  %v2496_v52 = vld [vmem:[#allocation2 + $0x5b8] ss:$12 sps:$4 sm:$0xff]  }
 0x349   :  { %v867_v56 = vsub.f32 %v865_v54, %v866_v55  ;;  %v2498_v54 = vld [vmem:[#allocation2 + $0x5e8] ss:$12 sps:$4 sm:$0xff]  }
 0x34b   :  { %v868_v57 = vmax.f32 %v867_v56, 0.0 }
 0x34d   :  { %v871_v58 = vadd.f32 1e-05, %v868_v57 }
 0x34f   :  { %2547 = vrsqrt.f32 %v871_v58 }
 0x359   :  { %v2548_v61 = vpop.eup %2547 }
 0x35a   :  { %v873_v62 = vmul.f32 %v2548_v61, %v869_v60 }
 0x35c   :  { %v874_v2 = vmul.f32 %v873_v62, %v864_v53  ;;  %v876_v3 = vmul.f32 %v873_v62, %v850_v41  ;;  %v1003_v41 = vld [vmem:[#allocation5 + $0x3] ss:$0 sm:$0xff]  ;;  %v2497_v53 = vld [vmem:[#allocation2 + $0x5d0] ss:$12 sps:$4 sm:$0xff]  }
 0x35e   :  { %v875_v5 = vsub.f32 %v870_v1, %v874_v2 }
 0x360   :  { %v877_v6 = vadd.f32 %v876_v3, %v875_v5 }
 0x362   :  { %v894_v7 = vpack.c.bf16 %v877_v6, %v877_v6 }
 0x364   :  { %2257 = vmatmul.mubr.bf16.vlgmr.msra.gmra.mrb[8].mxu1 %v894_v7 }
 0x365   :  { %2296 = vmatprep.mubr.msk.bf16.mxu1 %vm2642_vm0, %v2641_v0  ;;  %2281 = vmatpush3.bf16.msra.mxu1 %v2491_v47 }
 0x366   :  { %2282 = vmatprep.subr.bf16.mxu1 %v2641_v0 }
 0x369   :  { %2283 = vmatpush3.bf16.msra.mxu1 %v2492_v48 }
 0x36a   :  { %2284 = vmatprep.subr.bf16.mxu1 %v2641_v0 }
 0x36d   :  { %2285 = vmatpush3.bf16.msra.mxu1 %v2493_v49 }
 0x36e   :  { %2286 = vmatprep.subr.bf16.mxu1 %v2641_v0 }
 0x371   :  { %2287 = vmatpush3.bf16.msra.mxu1 %v2494_v50 }
 0x372   :  { %2288 = vmatprep.subr.bf16.mxu1 %v2641_v0 }
 0x375   :  { %2289 = vmatpush3.bf16.msra.mxu1 %v2495_v51 }
 0x376   :  { %2290 = vmatprep.subr.bf16.mxu1 %v2641_v0 }
 0x379   :  { %2291 = vmatpush3.bf16.msra.mxu1 %v2496_v52 }
 0x37a   :  { %2292 = vmatprep.subr.bf16.mxu1 %v2641_v0 }
 0x37d   :  { %2293 = vmatpush3.bf16.msra.mxu1 %v2497_v53 }
 0x37e   :  { %2294 = vmatprep.subr.bf16.mxu1 %v2641_v0 }
 0x381   :  { %2295 = vmatpush3.bf16.msra.mxu1 %v2498_v54 }
 0x382   :  { %2320 = vmatprep.subr.bf16.mxu1 %v2641_v0 }
 0x437   :  { %v977_v16 = vpop.f32.mrb[8].mxu1 }
 0x438   :  { %v983_v17 = vmul.f32 0.01, %v977_v16  ;;  %v2258_v18 = vpop.f32.mrb[9].mxu1 }
 0x439   :  { %v980_v19 = vpop.f32.mrb[10].mxu1 }
 0x43a   :  { %v984_v20 = vmax.f32 %v977_v16, %v983_v17  ;;  %v2259_v21 = vpop.f32.mrb[11].mxu1 }
 0x43c   :  { %v985_v22 = vrot.slane %v984_v20, 4  ;;  %v991_v23 = vmul.f32 %v984_v20, %v984_v20 }
 0x43e   :  { %v986_v24 = vadd.f32 %v985_v22, %v984_v20  ;;  %v992_v25 = vrot.slane %v991_v23, 4 }
 0x440   :  { %v987_v26 = vrot.slane %v986_v24, 2  ;;  %v993_v27 = vadd.f32 %v992_v25, %v991_v23  ;;  %v1138_v23 = vld [vmem:[#allocation5 + $0x1e] ss:$0 sm:$0xff] }
 0x442   :  { %v988_v28 = vadd.f32 %v987_v26, %v986_v24  ;;  %v994_v29 = vrot.slane %v993_v27, 2 }
 0x444   :  { %v989_v30 = vrot.slane %v988_v28, 1  ;;  %v995_v31 = vadd.f32 %v994_v29, %v993_v27  ;;  %v2499_v29 = vld [vmem:[#allocation2 + $0x600] ss:$12 sps:$4 sm:$0xff]  }
 0x446   :  { %v990_v32 = vadd.f32 %v989_v30, %v988_v28  ;;  %v996_v33 = vrot.slane %v995_v31, 1  ;;  %v2500_v30 = vld [vmem:[#allocation2 + $0x618] ss:$12 sps:$4 sm:$0xff]  }
 0x448   :  { %v997_v34 = vadd.f32 %v996_v33, %v995_v31  ;;  %v998_v35 = vmul.f32 0.125, %v990_v32  ;;  %v2501_v31 = vld [vmem:[#allocation2 + $0x630] ss:$12 sps:$4 sm:$0xff]   ;;  %v2502_v32 = vld [vmem:[#allocation2 + $0x648] ss:$12 sps:$4 sm:$0xff]  }
 0x449   :  { %v2503_v33 = vld [vmem:[#allocation2 + $0x660] ss:$12 sps:$4 sm:$0xff]  }
 0x44a   :  { %v999_v36 = vmul.f32 0.125, %v997_v34  ;;  %v1000_v37 = vmul.f32 %v998_v35, %v998_v35  ;;  %v2504_v34 = vld [vmem:[#allocation2 + $0x678] ss:$12 sps:$4 sm:$0xff]  }
 0x44c   :  { %v1001_v38 = vsub.f32 %v999_v36, %v1000_v37  ;;  %v2506_v36 = vld [vmem:[#allocation2 + $0x6a8] ss:$12 sps:$4 sm:$0xff]  }
 0x44e   :  { %v1002_v39 = vmax.f32 %v1001_v38, 0.0 }
 0x450   :  { %v1005_v40 = vadd.f32 1e-05, %v1002_v39 }
 0x452   :  { %2549 = vrsqrt.f32 %v1005_v40 }
 0x45c   :  { %v2550_v42 = vpop.eup %2549 }
 0x45d   :  { %v1007_v43 = vmul.f32 %v2550_v42, %v1003_v41 }
 0x45f   :  { %v1008_v63 = vmul.f32 %v1007_v43, %v998_v35  ;;  %v1010_v4 = vmul.f32 %v1007_v43, %v984_v20  ;;  %v1137_v20 = vld [vmem:[#allocation5 + $0x4] ss:$0 sm:$0xff]  ;;  %v2505_v35 = vld [vmem:[#allocation2 + $0x690] ss:$12 sps:$4 sm:$0xff]  }
 0x461   :  { %v1009_v44 = vsub.f32 %v1004_v59, %v1008_v63 }
 0x463   :  { %v1011_v45 = vadd.f32 %v1010_v4, %v1009_v44 }
 0x465   :  { %v1028_v46 = vpack.c.bf16 %v1011_v45, %v1011_v45 }
 0x467   :  { %2277 = vmatmul.mubr.bf16.vlgmr.msra.gmra.mrb[12].mxu0 %v1028_v46 }
 0x468   :  { %2316 = vmatprep.mubr.msk.bf16.mxu0 %vm2642_vm0, %v2641_v0  ;;  %2301 = vmatpush3.bf16.msra.mxu0 %v2499_v29 }
 0x469   :  { %2302 = vmatprep.subr.bf16.mxu0 %v2641_v0 }
 0x46c   :  { %2303 = vmatpush3.bf16.msra.mxu0 %v2500_v30 }
 0x46d   :  { %2304 = vmatprep.subr.bf16.mxu0 %v2641_v0 }
 0x470   :  { %2305 = vmatpush3.bf16.msra.mxu0 %v2501_v31 }
 0x471   :  { %2306 = vmatprep.subr.bf16.mxu0 %v2641_v0 }
 0x474   :  { %2307 = vmatpush3.bf16.msra.mxu0 %v2502_v32 }
 0x475   :  { %2308 = vmatprep.subr.bf16.mxu0 %v2641_v0 }
 0x478   :  { %2309 = vmatpush3.bf16.msra.mxu0 %v2503_v33 }
 0x479   :  { %2310 = vmatprep.subr.bf16.mxu0 %v2641_v0 }
 0x47c   :  { %2311 = vmatpush3.bf16.msra.mxu0 %v2504_v34 }
 0x47d   :  { %2312 = vmatprep.subr.bf16.mxu0 %v2641_v0 }
 0x480   :  { %2313 = vmatpush3.bf16.msra.mxu0 %v2505_v35 }
 0x481   :  { %2314 = vmatprep.subr.bf16.mxu0 %v2641_v0 }
 0x484   :  { %2315 = vmatpush3.bf16.msra.mxu0 %v2506_v36 }
 0x485   :  { %2340 = vmatprep.subr.bf16.mxu0 %v2641_v0 }
 0x53a   :  { %v1111_v55 = vpop.f32.mrb[12].mxu0 }
 0x53b   :  { %v1117_v56 = vmul.f32 0.01, %v1111_v55  ;;  %v2278_v57 = vpop.f32.mrb[13].mxu0 }
 0x53c   :  { %v1114_v58 = vpop.f32.mrb[14].mxu0 }
 0x53d   :  { %v1118_v60 = vmax.f32 %v1111_v55, %v1117_v56  ;;  %v2279_v61 = vpop.f32.mrb[15].mxu0 }
 0x53f   :  { %v1119_v62 = vrot.slane %v1118_v60, 4  ;;  %v1125_v1 = vmul.f32 %v1118_v60, %v1118_v60 }
 0x541   :  { %v1120_v2 = vadd.f32 %v1119_v62, %v1118_v60  ;;  %v1126_v3 = vrot.slane %v1125_v1, 4 }
 0x543   :  { %v1121_v5 = vrot.slane %v1120_v2, 2  ;;  %v1127_v6 = vadd.f32 %v1126_v3, %v1125_v1  ;;  %v1272_v1 = vld [vmem:[#allocation5 + $0x1f] ss:$0 sm:$0xff] }
 0x545   :  { %v1122_v7 = vadd.f32 %v1121_v5, %v1120_v2  ;;  %v1128_v8 = vrot.slane %v1127_v6, 2 }
 0x547   :  { %v1123_v9 = vrot.slane %v1122_v7, 1  ;;  %v1129_v10 = vadd.f32 %v1128_v8, %v1127_v6  ;;  %v2507_v8 = vld [vmem:[#allocation2 + $0x6c0] ss:$12 sps:$4 sm:$0xff]  }
 0x549   :  { %v1124_v11 = vadd.f32 %v1123_v9, %v1122_v7  ;;  %v1130_v12 = vrot.slane %v1129_v10, 1  ;;  %v2508_v9 = vld [vmem:[#allocation2 + $0x6d8] ss:$12 sps:$4 sm:$0xff]  }
 0x54b   :  { %v1131_v13 = vadd.f32 %v1130_v12, %v1129_v10  ;;  %v1132_v14 = vmul.f32 0.125, %v1124_v11  ;;  %v2509_v10 = vld [vmem:[#allocation2 + $0x6f0] ss:$12 sps:$4 sm:$0xff]   ;;  %v2510_v11 = vld [vmem:[#allocation2 + $0x708] ss:$12 sps:$4 sm:$0xff]  }
 0x54c   :  { %v2511_v12 = vld [vmem:[#allocation2 + $0x720] ss:$12 sps:$4 sm:$0xff]  }
 0x54d   :  { %v1133_v15 = vmul.f32 0.125, %v1131_v13  ;;  %v1134_v16 = vmul.f32 %v1132_v14, %v1132_v14  ;;  %v2512_v13 = vld [vmem:[#allocation2 + $0x738] ss:$12 sps:$4 sm:$0xff]  }
 0x54f   :  { %v1135_v17 = vsub.f32 %v1133_v15, %v1134_v16  ;;  %v2514_v15 = vld [vmem:[#allocation2 + $0x768] ss:$12 sps:$4 sm:$0xff]  }
 0x551   :  { %v1136_v18 = vmax.f32 %v1135_v17, 0.0 }
 0x553   :  { %v1139_v19 = vadd.f32 1e-05, %v1136_v18 }
 0x555   :  { %2551 = vrsqrt.f32 %v1139_v19 }
 0x55f   :  { %v2552_v21 = vpop.eup %2551 }
 0x560   :  { %v1141_v22 = vmul.f32 %v2552_v21, %v1137_v20 }
 0x562   :  { %v1142_v24 = vmul.f32 %v1141_v22, %v1132_v14  ;;  %v1144_v25 = vmul.f32 %v1141_v22, %v1118_v60  ;;  %v1271_v60 = vld [vmem:[#allocation5 + $0x5] ss:$0 sm:$0xff]  ;;  %v2513_v14 = vld [vmem:[#allocation2 + $0x750] ss:$12 sps:$4 sm:$0xff]  }
 0x564   :  { %v1143_v26 = vsub.f32 %v1138_v23, %v1142_v24 }
 0x566   :  { %v1145_v27 = vadd.f32 %v1144_v25, %v1143_v26 }
 0x568   :  { %v1162_v28 = vpack.c.bf16 %v1145_v27, %v1145_v27 }
 0x56a   :  { %2297 = vmatmul.mubr.bf16.vlgmr.msra.gmra.mrb[12].mxu1 %v1162_v28 }
 0x56b   :  { %2336 = vmatprep.mubr.msk.bf16.mxu1 %vm2642_vm0, %v2641_v0  ;;  %2321 = vmatpush3.bf16.msra.mxu1 %v2507_v8 }
 0x56c   :  { %2322 = vmatprep.subr.bf16.mxu1 %v2641_v0 }
 0x56f   :  { %2323 = vmatpush3.bf16.msra.mxu1 %v2508_v9 }
 0x570   :  { %2324 = vmatprep.subr.bf16.mxu1 %v2641_v0 }
 0x573   :  { %2325 = vmatpush3.bf16.msra.mxu1 %v2509_v10 }
 0x574   :  { %2326 = vmatprep.subr.bf16.mxu1 %v2641_v0 }
 0x577   :  { %2327 = vmatpush3.bf16.msra.mxu1 %v2510_v11 }
 0x578   :  { %2328 = vmatprep.subr.bf16.mxu1 %v2641_v0 }
 0x57b   :  { %2329 = vmatpush3.bf16.msra.mxu1 %v2511_v12 }
 0x57c   :  { %2330 = vmatprep.subr.bf16.mxu1 %v2641_v0 }
 0x57f   :  { %2331 = vmatpush3.bf16.msra.mxu1 %v2512_v13 }
 0x580   :  { %2332 = vmatprep.subr.bf16.mxu1 %v2641_v0 }
 0x583   :  { %2333 = vmatpush3.bf16.msra.mxu1 %v2513_v14 }
 0x584   :  { %2334 = vmatprep.subr.bf16.mxu1 %v2641_v0 }
 0x587   :  { %2335 = vmatpush3.bf16.msra.mxu1 %v2514_v15 }
 0x588   :  { %2360 = vmatprep.subr.bf16.mxu1 %v2641_v0 }
 0x63d   :  { %v1245_v37 = vpop.f32.mrb[12].mxu1 }
 0x63e   :  { %v1251_v38 = vmul.f32 0.01, %v1245_v37  ;;  %v2298_v39 = vpop.f32.mrb[13].mxu1 }
 0x63f   :  { %v1248_v40 = vpop.f32.mrb[14].mxu1 }
 0x640   :  { %v1252_v41 = vmax.f32 %v1245_v37, %v1251_v38  ;;  %v2299_v42 = vpop.f32.mrb[15].mxu1 }
 0x642   :  { %v1253_v43 = vrot.slane %v1252_v41, 4  ;;  %v1259_v59 = vmul.f32 %v1252_v41, %v1252_v41 }
 0x644   :  { %v1254_v63 = vadd.f32 %v1253_v43, %v1252_v41  ;;  %v1260_v4 = vrot.slane %v1259_v59, 4 }
 0x646   :  { %v1255_v44 = vrot.slane %v1254_v63, 2  ;;  %v1261_v45 = vadd.f32 %v1260_v4, %v1259_v59  ;;  %v1406_v59 = vld [vmem:[#allocation5 + $0x30] ss:$0 sm:$0xff] }
 0x648   :  { %v1256_v46 = vadd.f32 %v1255_v44, %v1254_v63  ;;  %v1262_v47 = vrot.slane %v1261_v45, 2 }
 0x64a   :  { %v1257_v48 = vrot.slane %v1256_v46, 1  ;;  %v1263_v49 = vadd.f32 %v1262_v47, %v1261_v45  ;;  %v2515_v47 = vld [vmem:[#allocation2 + $0x780] ss:$12 sps:$4 sm:$0xff]  }
 0x64c   :  { %v1258_v50 = vadd.f32 %v1257_v48, %v1256_v46  ;;  %v1264_v51 = vrot.slane %v1263_v49, 1  ;;  %v2516_v48 = vld [vmem:[#allocation2 + $0x798] ss:$12 sps:$4 sm:$0xff]  }
 0x64e   :  { %v1265_v52 = vadd.f32 %v1264_v51, %v1263_v49  ;;  %v1266_v53 = vmul.f32 0.125, %v1258_v50  ;;  %v2517_v49 = vld [vmem:[#allocation2 + $0x7b0] ss:$12 sps:$4 sm:$0xff]   ;;  %v2518_v50 = vld [vmem:[#allocation2 + $0x7c8] ss:$12 sps:$4 sm:$0xff]  }
 0x64f   :  { %v2519_v51 = vld [vmem:[#allocation2 + $0x7e0] ss:$12 sps:$4 sm:$0xff]  }
 0x650   :  { %v1267_v54 = vmul.f32 0.125, %v1265_v52  ;;  %v1268_v55 = vmul.f32 %v1266_v53, %v1266_v53  ;;  %v2520_v52 = vld [vmem:[#allocation2 + $0x7f8] ss:$12 sps:$4 sm:$0xff]  }
 0x652   :  { %v1269_v56 = vsub.f32 %v1267_v54, %v1268_v55  ;;  %v2522_v54 = vld [vmem:[#allocation2 + $0x828] ss:$12 sps:$4 sm:$0xff]  }
 0x654   :  { %v1270_v57 = vmax.f32 %v1269_v56, 0.0 }
 0x656   :  { %v1273_v58 = vadd.f32 1e-05, %v1270_v57 }
 0x658   :  { %2553 = vrsqrt.f32 %v1273_v58 }
 0x662   :  { %v2554_v61 = vpop.eup %2553 }
 0x663   :  { %v1275_v62 = vmul.f32 %v2554_v61, %v1271_v60 }
 0x665   :  { %v1276_v2 = vmul.f32 %v1275_v62, %v1266_v53  ;;  %v1278_v3 = vmul.f32 %v1275_v62, %v1252_v41  ;;  %v1405_v41 = vld [vmem:[#allocation5 + $0x6] ss:$0 sm:$0xff]  ;;  %v2521_v53 = vld [vmem:[#allocation2 + $0x810] ss:$12 sps:$4 sm:$0xff]  }
 0x667   :  { %v1277_v5 = vsub.f32 %v1272_v1, %v1276_v2 }
 0x669   :  { %v1279_v6 = vadd.f32 %v1278_v3, %v1277_v5 }
 0x66b   :  { %v1296_v7 = vpack.c.bf16 %v1279_v6, %v1279_v6 }
 0x66d   :  { %2317 = vmatmul.mubr.bf16.vlgmr.msra.gmra.mrb[16].mxu0 %v1296_v7 }
 0x66e   :  { %2356 = vmatprep.mubr.msk.bf16.mxu0 %vm2642_vm0, %v2641_v0  ;;  %2341 = vmatpush3.bf16.msra.mxu0 %v2515_v47 }
 0x66f   :  { %2342 = vmatprep.subr.bf16.mxu0 %v2641_v0 }
 0x672   :  { %2343 = vmatpush3.bf16.msra.mxu0 %v2516_v48 }
 0x673   :  { %2344 = vmatprep.subr.bf16.mxu0 %v2641_v0 }
 0x676   :  { %2345 = vmatpush3.bf16.msra.mxu0 %v2517_v49 }
 0x677   :  { %2346 = vmatprep.subr.bf16.mxu0 %v2641_v0 }
 0x67a   :  { %2347 = vmatpush3.bf16.msra.mxu0 %v2518_v50 }
 0x67b   :  { %2348 = vmatprep.subr.bf16.mxu0 %v2641_v0 }
 0x67e   :  { %2349 = vmatpush3.bf16.msra.mxu0 %v2519_v51 }
 0x67f   :  { %2350 = vmatprep.subr.bf16.mxu0 %v2641_v0 }
 0x682   :  { %2351 = vmatpush3.bf16.msra.mxu0 %v2520_v52 }
 0x683   :  { %2352 = vmatprep.subr.bf16.mxu0 %v2641_v0 }
 0x686   :  { %2353 = vmatpush3.bf16.msra.mxu0 %v2521_v53 }
 0x687   :  { %2354 = vmatprep.subr.bf16.mxu0 %v2641_v0 }
 0x68a   :  { %2355 = vmatpush3.bf16.msra.mxu0 %v2522_v54 }
 0x68b   :  { %2380 = vmatprep.subr.bf16.mxu0 %v2641_v0 }
 0x740   :  { %v1379_v16 = vpop.f32.mrb[16].mxu0 }
 0x741   :  { %v1385_v17 = vmul.f32 0.01, %v1379_v16  ;;  %v2318_v18 = vpop.f32.mrb[17].mxu0 }
 0x742   :  { %v1382_v19 = vpop.f32.mrb[18].mxu0 }
 0x743   :  { %v1386_v20 = vmax.f32 %v1379_v16, %v1385_v17  ;;  %v2319_v21 = vpop.f32.mrb[19].mxu0 }
 0x745   :  { %v1387_v22 = vrot.slane %v1386_v20, 4  ;;  %v1393_v23 = vmul.f32 %v1386_v20, %v1386_v20 }
 0x747   :  { %v1388_v24 = vadd.f32 %v1387_v22, %v1386_v20  ;;  %v1394_v25 = vrot.slane %v1393_v23, 4 }
 0x749   :  { %v1389_v26 = vrot.slane %v1388_v24, 2  ;;  %v1395_v27 = vadd.f32 %v1394_v25, %v1393_v23  ;;  %v1540_v23 = vld [vmem:[#allocation5 + $0x31] ss:$0 sm:$0xff] }
 0x74b   :  { %v1390_v28 = vadd.f32 %v1389_v26, %v1388_v24  ;;  %v1396_v29 = vrot.slane %v1395_v27, 2 }
 0x74d   :  { %v1391_v30 = vrot.slane %v1390_v28, 1  ;;  %v1397_v31 = vadd.f32 %v1396_v29, %v1395_v27  ;;  %v2523_v29 = vld [vmem:[#allocation2 + $0x840] ss:$12 sps:$4 sm:$0xff]  }
 0x74f   :  { %v1392_v32 = vadd.f32 %v1391_v30, %v1390_v28  ;;  %v1398_v33 = vrot.slane %v1397_v31, 1  ;;  %v2524_v30 = vld [vmem:[#allocation2 + $0x858] ss:$12 sps:$4 sm:$0xff]  }
 0x751   :  { %v1399_v34 = vadd.f32 %v1398_v33, %v1397_v31  ;;  %v1400_v35 = vmul.f32 0.125, %v1392_v32  ;;  %v2525_v31 = vld [vmem:[#allocation2 + $0x870] ss:$12 sps:$4 sm:$0xff]   ;;  %v2526_v32 = vld [vmem:[#allocation2 + $0x888] ss:$12 sps:$4 sm:$0xff]  }
 0x752   :  { %v2527_v33 = vld [vmem:[#allocation2 + $0x8a0] ss:$12 sps:$4 sm:$0xff]  }
 0x753   :  { %v1401_v36 = vmul.f32 0.125, %v1399_v34  ;;  %v1402_v37 = vmul.f32 %v1400_v35, %v1400_v35  ;;  %v2528_v34 = vld [vmem:[#allocation2 + $0x8b8] ss:$12 sps:$4 sm:$0xff]  }
 0x755   :  { %v1403_v38 = vsub.f32 %v1401_v36, %v1402_v37  ;;  %v2530_v36 = vld [vmem:[#allocation2 + $0x8e8] ss:$12 sps:$4 sm:$0xff]  }
 0x757   :  { %v1404_v39 = vmax.f32 %v1403_v38, 0.0 }
 0x759   :  { %v1407_v40 = vadd.f32 1e-05, %v1404_v39 }
 0x75b   :  { %2555 = vrsqrt.f32 %v1407_v40 }
 0x765   :  { %v2556_v42 = vpop.eup %2555 }
 0x766   :  { %v1409_v43 = vmul.f32 %v2556_v42, %v1405_v41 }
 0x768   :  { %v1410_v63 = vmul.f32 %v1409_v43, %v1400_v35  ;;  %v1412_v4 = vmul.f32 %v1409_v43, %v1386_v20  ;;  %v1539_v20 = vld [vmem:[#allocation5 + $0x7] ss:$0 sm:$0xff]  ;;  %v2529_v35 = vld [vmem:[#allocation2 + $0x8d0] ss:$12 sps:$4 sm:$0xff]  }
 0x76a   :  { %v1411_v44 = vsub.f32 %v1406_v59, %v1410_v63 }
 0x76c   :  { %v1413_v45 = vadd.f32 %v1412_v4, %v1411_v44 }
 0x76e   :  { %v1430_v46 = vpack.c.bf16 %v1413_v45, %v1413_v45 }
 0x770   :  { %2337 = vmatmul.mubr.bf16.vlgmr.msra.gmra.mrb[16].mxu1 %v1430_v46 }
 0x771   :  { %2376 = vmatprep.mubr.msk.bf16.mxu1 %vm2642_vm0, %v2641_v0  ;;  %2361 = vmatpush3.bf16.msra.mxu1 %v2523_v29 }
 0x772   :  { %2362 = vmatprep.subr.bf16.mxu1 %v2641_v0 }
 0x775   :  { %2363 = vmatpush3.bf16.msra.mxu1 %v2524_v30 }
 0x776   :  { %2364 = vmatprep.subr.bf16.mxu1 %v2641_v0 }
 0x779   :  { %2365 = vmatpush3.bf16.msra.mxu1 %v2525_v31 }
 0x77a   :  { %2366 = vmatprep.subr.bf16.mxu1 %v2641_v0 }
 0x77d   :  { %2367 = vmatpush3.bf16.msra.mxu1 %v2526_v32 }
 0x77e   :  { %2368 = vmatprep.subr.bf16.mxu1 %v2641_v0 }
 0x781   :  { %2369 = vmatpush3.bf16.msra.mxu1 %v2527_v33 }
 0x782   :  { %2370 = vmatprep.subr.bf16.mxu1 %v2641_v0 }
 0x785   :  { %2371 = vmatpush3.bf16.msra.mxu1 %v2528_v34 }
 0x786   :  { %2372 = vmatprep.subr.bf16.mxu1 %v2641_v0 }
 0x789   :  { %2373 = vmatpush3.bf16.msra.mxu1 %v2529_v35 }
 0x78a   :  { %2374 = vmatprep.subr.bf16.mxu1 %v2641_v0 }
 0x78d   :  { %2375 = vmatpush3.bf16.msra.mxu1 %v2530_v36 }
 0x843   :  { %v1513_v55 = vpop.f32.mrb[16].mxu1 }
 0x844   :  { %v1519_v56 = vmul.f32 0.01, %v1513_v55  ;;  %v2338_v57 = vpop.f32.mrb[17].mxu1 }
 0x845   :  { %v1516_v58 = vpop.f32.mrb[18].mxu1 }
 0x846   :  { %v1520_v60 = vmax.f32 %v1513_v55, %v1519_v56  ;;  %v2339_v61 = vpop.f32.mrb[19].mxu1 }
 0x848   :  { %v1521_v62 = vrot.slane %v1520_v60, 4  ;;  %v1527_v1 = vmul.f32 %v1520_v60, %v1520_v60 }
 0x84a   :  { %v1522_v2 = vadd.f32 %v1521_v62, %v1520_v60  ;;  %v1528_v3 = vrot.slane %v1527_v1, 4 }
 0x84c   :  { %v1523_v5 = vrot.slane %v1522_v2, 2  ;;  %v1529_v6 = vadd.f32 %v1528_v3, %v1527_v1  ;;  %v1674_v1 = vld [vmem:[#allocation5 + $0x32] ss:$0 sm:$0xff] }
 0x84e   :  { %v1524_v7 = vadd.f32 %v1523_v5, %v1522_v2  ;;  %v1530_v8 = vrot.slane %v1529_v6, 2 }
 0x850   :  { %v1525_v9 = vrot.slane %v1524_v7, 1  ;;  %v1531_v10 = vadd.f32 %v1530_v8, %v1529_v6  ;;  %v2531_v8 = vld [vmem:[#allocation2 + $0x900] ss:$12 sps:$4 sm:$0xff]  }
 0x852   :  { %v1526_v11 = vadd.f32 %v1525_v9, %v1524_v7  ;;  %v1532_v12 = vrot.slane %v1531_v10, 1  ;;  %v2532_v9 = vld [vmem:[#allocation2 + $0x918] ss:$12 sps:$4 sm:$0xff]  }
 0x854   :  { %v1533_v13 = vadd.f32 %v1532_v12, %v1531_v10  ;;  %v1534_v14 = vmul.f32 0.125, %v1526_v11  ;;  %v2533_v10 = vld [vmem:[#allocation2 + $0x930] ss:$12 sps:$4 sm:$0xff]   ;;  %v2534_v11 = vld [vmem:[#allocation2 + $0x948] ss:$12 sps:$4 sm:$0xff]  }
 0x855   :  { %v2535_v12 = vld [vmem:[#allocation2 + $0x960] ss:$12 sps:$4 sm:$0xff]  }
 0x856   :  { %v1535_v15 = vmul.f32 0.125, %v1533_v13  ;;  %v1536_v16 = vmul.f32 %v1534_v14, %v1534_v14  ;;  %v2536_v13 = vld [vmem:[#allocation2 + $0x978] ss:$12 sps:$4 sm:$0xff]  }
 0x858   :  { %v1537_v17 = vsub.f32 %v1535_v15, %v1536_v16  ;;  %v2538_v15 = vld [vmem:[#allocation2 + $0x9a8] ss:$12 sps:$4 sm:$0xff]  }
 0x85a   :  { %v1538_v18 = vmax.f32 %v1537_v17, 0.0 }
 0x85c   :  { %v1541_v19 = vadd.f32 1e-05, %v1538_v18 }
 0x85e   :  { %2557 = vrsqrt.f32 %v1541_v19 }
 0x868   :  { %v2558_v21 = vpop.eup %2557 }
 0x869   :  { %v1543_v22 = vmul.f32 %v2558_v21, %v1539_v20 }
 0x86b   :  { %v1544_v24 = vmul.f32 %v1543_v22, %v1534_v14  ;;  %v1546_v25 = vmul.f32 %v1543_v22, %v1520_v60  ;;  %v1673_v60 = vld [vmem:[#allocation5 + $0x18] ss:$0 sm:$0xff]  ;;  %v2537_v14 = vld [vmem:[#allocation2 + $0x990] ss:$12 sps:$4 sm:$0xff]  }
 0x86d   :  { %v1545_v26 = vsub.f32 %v1540_v23, %v1544_v24 }
 0x86f   :  { %v1547_v27 = vadd.f32 %v1546_v25, %v1545_v26 }
 0x871   :  { %v1564_v28 = vpack.c.bf16 %v1547_v27, %v1547_v27 }
 0x873   :  { %2357 = vmatmul.mubr.bf16.vlgmr.msra.gmra.mrb[20].mxu0 %v1564_v28 }
 0x874   :  { %2396 = vmatprep.mubr.msk.bf16.mxu0 %vm2642_vm0, %v2641_v0  ;;  %2381 = vmatpush3.bf16.msra.mxu0 %v2531_v8 }
 0x875   :  { %2382 = vmatprep.subr.bf16.mxu0 %v2641_v0 }
 0x878   :  { %2383 = vmatpush3.bf16.msra.mxu0 %v2532_v9 }
 0x879   :  { %2384 = vmatprep.subr.bf16.mxu0 %v2641_v0 }
 0x87c   :  { %2385 = vmatpush3.bf16.msra.mxu0 %v2533_v10 }
 0x87d   :  { %2386 = vmatprep.subr.bf16.mxu0 %v2641_v0 }
 0x880   :  { %2387 = vmatpush3.bf16.msra.mxu0 %v2534_v11 }
 0x881   :  { %2388 = vmatprep.subr.bf16.mxu0 %v2641_v0 }
 0x884   :  { %2389 = vmatpush3.bf16.msra.mxu0 %v2535_v12 }
 0x885   :  { %2390 = vmatprep.subr.bf16.mxu0 %v2641_v0 }
 0x888   :  { %2391 = vmatpush3.bf16.msra.mxu0 %v2536_v13 }
 0x889   :  { %2392 = vmatprep.subr.bf16.mxu0 %v2641_v0 }
 0x88c   :  { %2393 = vmatpush3.bf16.msra.mxu0 %v2537_v14 }
 0x88d   :  { %2394 = vmatprep.subr.bf16.mxu0 %v2641_v0 }
 0x890   :  { %2395 = vmatpush3.bf16.msra.mxu0 %v2538_v15 }
 0x946   :  { %v1647_v37 = vpop.f32.mrb[20].mxu0 }
 0x947   :  { %v1653_v38 = vmul.f32 0.01, %v1647_v37  ;;  %v2358_v39 = vpop.f32.mrb[21].mxu0 }
 0x948   :  { %v1650_v40 = vpop.f32.mrb[22].mxu0 }
 0x949   :  { %v1654_v41 = vmax.f32 %v1647_v37, %v1653_v38  ;;  %v2359_v42 = vpop.f32.mrb[23].mxu0  ;;  %v1807_v40 = vld [vmem:[#allocation5 + $0x19] ss:$0 sm:$0xff] }
 0x94b   :  { %v1655_v43 = vrot.slane %v1654_v41, 4  ;;  %v1661_v59 = vmul.f32 %v1654_v41, %v1654_v41 }
 0x94d   :  { %v1656_v63 = vadd.f32 %v1655_v43, %v1654_v41  ;;  %v1662_v4 = vrot.slane %v1661_v59, 4  ;;  %v1808_v43 = vld [vmem:[#allocation5 + $0x33] ss:$0 sm:$0xff] }
 0x94f   :  { %v1657_v44 = vrot.slane %v1656_v63, 2  ;;  %v1663_v45 = vadd.f32 %v1662_v4, %v1661_v59 }
 0x951   :  { %v1658_v46 = vadd.f32 %v1657_v44, %v1656_v63  ;;  %v1664_v47 = vrot.slane %v1663_v45, 2 }
 0x953   :  { %v1659_v48 = vrot.slane %v1658_v46, 1  ;;  %v1665_v49 = vadd.f32 %v1664_v47, %v1663_v45 }
 0x955   :  { %v1660_v50 = vadd.f32 %v1659_v48, %v1658_v46  ;;  %v1666_v51 = vrot.slane %v1665_v49, 1  ;;  %v1832_v46 = vld [vmem:[#allocation5 + $0x34] ss:$0 sm:$0xff] }
 0x957   :  { %v1667_v52 = vadd.f32 %v1666_v51, %v1665_v49  ;;  %v1668_v53 = vmul.f32 0.125, %v1660_v50 }
 0x959   :  { %v1669_v54 = vmul.f32 0.125, %v1667_v52  ;;  %v1670_v55 = vmul.f32 %v1668_v53, %v1668_v53 }
 0x95b   :  { %v1671_v56 = vsub.f32 %v1669_v54, %v1670_v55 }
 0x95d   :  { %v1672_v57 = vmax.f32 %v1671_v56, 0.0 }
 0x95f   :  { %v1675_v58 = vadd.f32 1e-05, %v1672_v57 }
 0x961   :  { %2559 = vrsqrt.f32 %v1675_v58 }
 0x96b   :  { %v2560_v61 = vpop.eup %2559 }
 0x96c   :  { %v1677_v62 = vmul.f32 %v2560_v61, %v1673_v60 }
 0x96e   :  { %v1678_v2 = vmul.f32 %v1677_v62, %v1668_v53  ;;  %v1680_v3 = vmul.f32 %v1677_v62, %v1654_v41 }
 0x970   :  { %v1679_v5 = vsub.f32 %v1674_v1, %v1678_v2 }
 0x972   :  { %v1681_v6 = vadd.f32 %v1680_v3, %v1679_v5 }
 0x974   :  { %v1698_v7 = vpack.c.bf16 %v1681_v6, %v1681_v6 }
 0x976   :  { %2377 = vmatmul.mubr.bf16.vlgmr.msra.gmra.mrb[20].mxu1 %v1698_v7 }
 0xa49   :  { %v1781_v16 = vpop.f32.mrb[20].mxu1 }
 0xa4a   :  { %v1787_v17 = vmul.f32 0.01, %v1781_v16  ;;  %v2378_v18 = vpop.f32.mrb[21].mxu1 }
 0xa4b   :  { %v1784_v19 = vpop.f32.mrb[22].mxu1 }
 0xa4c   :  { %v1788_v20 = vmax.f32 %v1781_v16, %v1787_v17  ;;  %v2379_v21 = vpop.f32.mrb[23].mxu1 }
 0xa4e   :  { %v1789_v22 = vrot.slane %v1788_v20, 4  ;;  %v1795_v23 = vmul.f32 %v1788_v20, %v1788_v20 }
 0xa50   :  { %v1790_v24 = vadd.f32 %v1789_v22, %v1788_v20  ;;  %v1796_v25 = vrot.slane %v1795_v23, 4 }
 0xa52   :  { %v1791_v26 = vrot.slane %v1790_v24, 2  ;;  %v1797_v27 = vadd.f32 %v1796_v25, %v1795_v23 }
 0xa54   :  { %v1792_v28 = vadd.f32 %v1791_v26, %v1790_v24  ;;  %v1798_v29 = vrot.slane %v1797_v27, 2 }
 0xa56   :  { %v1793_v30 = vrot.slane %v1792_v28, 1  ;;  %v1799_v31 = vadd.f32 %v1798_v29, %v1797_v27 }
 0xa58   :  { %v1794_v32 = vadd.f32 %v1793_v30, %v1792_v28  ;;  %v1800_v33 = vrot.slane %v1799_v31, 1 }
 0xa5a   :  { %v1801_v0 = vadd.f32 %v1800_v33, %v1799_v31  ;;  %v1802_v34 = vmul.f32 0.125, %v1794_v32 }
 0xa5c   :  { %v1803_v35 = vmul.f32 0.125, %v1801_v0  ;;  %v1804_v36 = vmul.f32 %v1802_v34, %v1802_v34 }
 0xa5e   :  { %v1805_v37 = vsub.f32 %v1803_v35, %v1804_v36 }
 0xa60   :  { %v1806_v38 = vmax.f32 %v1805_v37, 0.0 }
 0xa62   :  { %v1809_v39 = vadd.f32 1e-05, %v1806_v38 }
 0xa64   :  { %2561 = vrsqrt.f32 %v1809_v39 }
 0xa6e   :  { %v2562_v41 = vpop.eup %2561 }
 0xa6f   :  { %v1811_v42 = vmul.f32 %v2562_v41, %v1807_v40 }
 0xa71   :  { %v1812_v59 = vmul.f32 %v1811_v42, %v1802_v34  ;;  %v1814_v63 = vmul.f32 %v1811_v42, %v1788_v20 }
 0xa73   :  { %v1813_v4 = vsub.f32 %v1808_v43, %v1812_v59 }
 0xa75   :  { %v1815_v44 = vadd.f32 %v1814_v63, %v1813_v4 }
 0xa77   :  { %v1833_v45 = vpack.c.bf16 %v1815_v44, %v1815_v44 }
 0xa79   :  { %2397 = vmatmul.mubr.bf16.vlgmr.msra.gmra.mrb[24].mxu0 %v1833_v45 }
 0xb4c   :  { %v1916_v47 = vpop.f32.mrb[24].mxu0 }
 0xb4d   :  { %v1917_v48 = vadd.f32 %v1916_v47, %v1832_v46  ;;  %v2398_v49 = vpop.f32.mrb[25].mxu0 }
 0xb4e   :  { %v1919_v50 = vpop.f32.mrb[26].mxu0 }
 0xb4f   :  { %1922 = vst [vmem:[#allocation7] sm:$0xff] %v1917_v48  ;;  %v2399_v51 = vpop.f32.mrb[27].mxu0 }
 0xb50   :  { %2618 = shalt.err (!%p2615_p6)
}
 0xb51   :  { %s2619_s17 = scalar_lea.hbm %s2839_s3, 128 }
 0xb52   :  { %p2620_p7 = scmp.ne.s32.totalorder %s2839_s3, %s2619_s17  ;;  %p2623_p8 = scmp.lt.u32.totalorder %s2619_s17, %s2839_s3 }
 0xb54   :  { %p2625_p9 = pnand %p2623_p8, %p2620_p7 }
 0xb56   :  { %2628 = shalt.err (!%p2625_p9)
}
 0xb57   :  { %1932 = dma.vmem_to_hbm [thread:$0]  %s1930_s13, 128, %s2839_s3, [#allocation4]  }
 0xb58   :  { %2633 = dma.done.wait [#allocation4], 128  }
 0xb59   :  { %2634 = vsyncadd [#allocation4], 4294967168 }
 0xb5a   :  { %1936 = vsyncpa [#allocation3], 1 }
 0xb5b   :  { %1937 = vsyncpa [#allocation6], 1 }
 0xb5c   :  { %1938 = vsyncpa [#allocation4], 1 }

</bundles_post_ra>
